<compile_context>
chip_gen: v6e
topology: v6e:2x2x1
jax: 0.10.0
libtpu: 0.0.40
codegen_flags: <defaults>
</compile_context>

<pallas_src>
import math

import jax
import jax.numpy as jnp
from jax.experimental import pallas as pl
from jax.experimental.pallas import tpu as pltpu


# ----------------------------------------------------------------------------
# Fused kernel
# ----------------------------------------------------------------------------
def _const_imap(b):
    # whole-array (weight) blocks: never change across the image grid axis
    return (0, 0)


def _make_fused_kernel(*, D, heads, S, N, eps, scale, recons):
    hd = D // heads

    def mm(a, w_ref, b_ref, activation=None):
        # bf16 operands on the MXU, f32 accumulation, f32 epilogue.
        acc = jnp.dot(a.astype(jnp.bfloat16),
                      w_ref[...].astype(jnp.bfloat16),
                      preferred_element_type=jnp.float32)
        acc = acc + b_ref[...]                      # bias is (1, N), broadcasts
        if activation == "gelu":
            # TODO(synk): PyTorch nn.GELU() default is exact erf; tanh approx used here.
            acc = jax.nn.gelu(acc, approximate=True)
        return acc

    def ln(x, g_ref, b_ref):
        mean = jnp.mean(x, axis=-1, keepdims=True)
        var = jnp.mean((x - mean) ** 2, axis=-1, keepdims=True)
        return (x - mean) * jax.lax.rsqrt(var + eps) * g_ref[...] + b_ref[...]

    def kernel(patches_ref,
               w_pe, b_pe, cls_tok, pos_cls, pos_tok,
               ln1_g, ln1_b, w_qkv, b_qkv, w_proj, b_proj,
               ln2_g, ln2_b, w_fc1, b_fc1, w_fc2, b_fc2,
               lnf_g, lnf_b, w_head, b_head, w_rec, b_rec,
               *rest):
        if recons:
            ftrs_ref, rec_ref, h_sc, attn_sc = rest
        else:
            ftrs_ref, h_sc, attn_sc = rest
            rec_ref = None

        # ---- patch embed + CLS token + positional embedding ----
        patch = patches_ref[0].astype(jnp.float32)          # [N, C*p*p]
        tok = mm(patch, w_pe, b_pe)                          # [N, D]
        h_sc[0:1, :] = cls_tok[...] + pos_cls[...]           # CLS row
        h_sc[1:, :] = tok + pos_tok[...]                     # patch rows
        h = h_sc[...]                                        # [S, D]

        # ---- transformer block: multi-head self-attention ----
        xn = ln(h, ln1_g, ln1_b)
        qkv = mm(xn, w_qkv, b_qkv)                           # [S, 3D]
        for hh in range(heads):                              # static unroll
            q = qkv[:, hh * hd:(hh + 1) * hd]                # [S, hd]
            k = qkv[:, D + hh * hd:D + (hh + 1) * hd]
            v = qkv[:, 2 * D + hh * hd:2 * D + (hh + 1) * hd]
            s = jax.lax.dot_general(
                q.astype(jnp.bfloat16), k.astype(jnp.bfloat16),
                (((1,), (1,)), ((), ())),
                preferred_element_type=jnp.float32) * scale  # [S, S]
            m = jnp.max(s, axis=-1, keepdims=True)
            e = jnp.exp(s - m)
            p = e * pl.reciprocal(jnp.sum(e, axis=-1, keepdims=True), approx=True)
            attn_sc[:, hh * hd:(hh + 1) * hd] = jnp.dot(
                p.astype(jnp.bfloat16), v.astype(jnp.bfloat16),
                preferred_element_type=jnp.float32)          # [S, hd]
        h = h + mm(attn_sc[...], w_proj, b_proj)

        # ---- transformer block: MLP ----
        xn2 = ln(h, ln2_g, ln2_b)
        h = h + mm(mm(xn2, w_fc1, b_fc1, activation="gelu"), w_fc2, b_fc2)

        # ---- final LN + shared head (+ recons head) ----
        out = ln(h, lnf_g, lnf_b)                            # [S, D]
        ftrs_ref[0] = mm(out, w_head, b_head).astype(ftrs_ref.dtype)   # [S, out_dim]
        if recons:
            # recons projection over all S rows; CLS row dropped in glue.
            rec_ref[0] = mm(out, w_rec, b_rec).astype(rec_ref.dtype)   # [S, patch_dim]

    return kernel


# ----------------------------------------------------------------------------
# Parameter initialization (deterministic, synthetic)
# ----------------------------------------------------------------------------
def init_params(key, *, C=3, patch=4, img=16, D=32, heads=4, mlp_hidden=64, out_dim=16):
    nH = img // patch
    N = nH * nH
    S = N + 1
    patch_dim = C * patch * patch
    ks = jax.random.split(key, 16)
    s = 0.02

    def nrm(k, shape):
        return (s * jax.random.normal(k, shape)).astype(jnp.float32)

    p = {
        "patch_size": patch, "embed_dim": D, "heads": heads,
        "w_pe": nrm(ks[0], (patch_dim, D)), "b_pe": jnp.zeros((D,), jnp.float32),
        "cls_token": nrm(ks[1], (1, 1, D)),
        "pos_embed": nrm(ks[2], (1, S, D)),
        "ln1_g": jnp.ones((D,), jnp.float32), "ln1_b": jnp.zeros((D,), jnp.float32),
        "w_qkv": nrm(ks[3], (D, 3 * D)), "b_qkv": jnp.zeros((3 * D,), jnp.float32),
        "w_proj": nrm(ks[4], (D, D)), "b_proj": jnp.zeros((D,), jnp.float32),
        "ln2_g": jnp.ones((D,), jnp.float32), "ln2_b": jnp.zeros((D,), jnp.float32),
        "w_fc1": nrm(ks[5], (D, mlp_hidden)), "b_fc1": jnp.zeros((mlp_hidden,), jnp.float32),
        "w_fc2": nrm(ks[6], (mlp_hidden, D)), "b_fc2": jnp.zeros((D,), jnp.float32),
        "lnf_g": jnp.ones((D,), jnp.float32), "lnf_b": jnp.zeros((D,), jnp.float32),
        "w_head": nrm(ks[7], (D, out_dim)), "b_head": jnp.zeros((out_dim,), jnp.float32),
        "w_rec": nrm(ks[8], (D, patch_dim)), "b_rec": jnp.zeros((patch_dim,), jnp.float32),
    }
    return p


# ----------------------------------------------------------------------------
# Forward pass equivalent of FullModelPipline.forward(x, recons)
# ----------------------------------------------------------------------------
def full_model_pipeline(params, x_list, recons=False):
    # torch.cat(x[0:]) : concatenate all crops along the batch dim
    x = jnp.concatenate(x_list, axis=0)                     # [B2, C, H, W] (NCHW)
    B2, C, H, W = x.shape
    p = params["patch_size"]
    D = params["embed_dim"]
    heads = params["heads"]
    hd = D // heads
    nH, nW = H // p, W // p
    N = nH * nW
    S = N + 1
    patch_dim = C * p * p
    out_dim = params["w_head"].shape[1]

    # ---- glue: patchify NCHW -> [B2, N, C*p*p] (pure layout) ----
    patches = (x.reshape(B2, C, nH, p, nW, p)
                .transpose(0, 2, 4, 1, 3, 5)
                .reshape(B2, N, patch_dim))

    pos = params["pos_embed"].reshape(S, D)
    weights = [
        params["w_pe"], params["b_pe"].reshape(1, -1),
        params["cls_token"].reshape(1, D),
        pos[0:1, :],                       # pos for CLS row
        pos[1:, :],                        # pos for patch rows
        params["ln1_g"].reshape(1, -1), params["ln1_b"].reshape(1, -1),
        params["w_qkv"], params["b_qkv"].reshape(1, -1),
        params["w_proj"], params["b_proj"].reshape(1, -1),
        params["ln2_g"].reshape(1, -1), params["ln2_b"].reshape(1, -1),
        params["w_fc1"], params["b_fc1"].reshape(1, -1),
        params["w_fc2"], params["b_fc2"].reshape(1, -1),
        params["lnf_g"].reshape(1, -1), params["lnf_b"].reshape(1, -1),
        params["w_head"], params["b_head"].reshape(1, -1),
        params["w_rec"], params["b_rec"].reshape(1, -1),
    ]

    in_specs = ([pl.BlockSpec((1, N, patch_dim), lambda b: (b, 0, 0))]
                + [pl.BlockSpec(w.shape, _const_imap) for w in weights])

    out_shapes = [jax.ShapeDtypeStruct((B2, S, out_dim), jnp.float32)]
    out_specs = [pl.BlockSpec((1, S, out_dim), lambda b: (b, 0, 0))]
    if recons:
        out_shapes.append(jax.ShapeDtypeStruct((B2, S, patch_dim), jnp.float32))
        out_specs.append(pl.BlockSpec((1, S, patch_dim), lambda b: (b, 0, 0)))

    kernel = _make_fused_kernel(D=D, heads=heads, S=S, N=N,
                                eps=1e-6, scale=1.0 / math.sqrt(hd), recons=recons)

    results = pl.pallas_call(
        kernel,
        out_shape=tuple(out_shapes),
        grid=(B2,),
        in_specs=in_specs,
        out_specs=tuple(out_specs),
        scratch_shapes=[pltpu.VMEM((S, D), jnp.float32),   # residual stream (CLS+patches)
                        pltpu.VMEM((S, D), jnp.float32)],  # per-head attention output
        compiler_params=pltpu.CompilerParams(
            dimension_semantics=("parallel",)),            # shard crops across TCs (v7x)
    )(patches, *weights)

    if recons:
        ftrs, rec = results
    else:
        (ftrs,) = results
        rec = None

    # ---- glue: split CLS/patch features, un-patchify reconstruction ----
    cls_ftrs = ftrs[:, 0]                                   # [B2, out_dim]
    data_ftrs = ftrs[:, 1:]                                 # [B2, N, out_dim]
    recons_imgs = None
    if recons:
        recons_imgs = (rec[:, 1:]                           # drop CLS row
                       .reshape(B2, nH, nW, C, p, p)
                       .transpose(0, 3, 1, 4, 2, 5)
                       .reshape(B2, C, H, W))               # NCHW, same as input crops
    return cls_ftrs, data_ftrs, recons_imgs


# ----------------------------------------------------------------------------
if __name__ == "__main__":
    key = jax.random.PRNGKey(0)
    k0, k1, kp = jax.random.split(key, 3)

    B, C, H, W = 2, 3, 16, 16
    # x is a list of crops, as in the PyTorch module's forward(torch.cat(x[0:]))
    x0 = jax.random.normal(k0, (B, C, H, W), dtype=jnp.float32)
    x1 = jax.random.normal(k1, (B, C, H, W), dtype=jnp.float32)

    params = init_params(kp, C=C, patch=4, img=H, D=32, heads=4, mlp_hidden=64, out_dim=16)

    cls_ftrs, data_ftrs, recons_imgs = full_model_pipeline(params, [x0, x1], recons=True)
    jax.block_until_ready((cls_ftrs, data_ftrs, recons_imgs))

    assert cls_ftrs.shape == (2 * B, 16)
    assert data_ftrs.shape == (2 * B, 16, 16)
    assert recons_imgs.shape == (2 * B, C, H, W)
    print("KERNEL_OK")
</pallas_src>

<mosaic_0001>
module attributes {stable_mosaic.version = 11 : i64} {
  func.func @kernel(%arg0: i32, %arg1: memref<1x16x48xf32, #tpu.memory_space<vmem>>, %arg2: memref<48x32xf32, #tpu.memory_space<vmem>>, %arg3: memref<1x32xf32, #tpu.memory_space<vmem>>, %arg4: memref<1x32xf32, #tpu.memory_space<vmem>>, %arg5: memref<1x32xf32, #tpu.memory_space<vmem>>, %arg6: memref<16x32xf32, #tpu.memory_space<vmem>>, %arg7: memref<1x32xf32, #tpu.memory_space<vmem>>, %arg8: memref<1x32xf32, #tpu.memory_space<vmem>>, %arg9: memref<32x96xf32, #tpu.memory_space<vmem>>, %arg10: memref<1x96xf32, #tpu.memory_space<vmem>>, %arg11: memref<32x32xf32, #tpu.memory_space<vmem>>, %arg12: memref<1x32xf32, #tpu.memory_space<vmem>>, %arg13: memref<1x32xf32, #tpu.memory_space<vmem>>, %arg14: memref<1x32xf32, #tpu.memory_space<vmem>>, %arg15: memref<32x64xf32, #tpu.memory_space<vmem>>, %arg16: memref<1x64xf32, #tpu.memory_space<vmem>>, %arg17: memref<64x32xf32, #tpu.memory_space<vmem>>, %arg18: memref<1x32xf32, #tpu.memory_space<vmem>>, %arg19: memref<1x32xf32, #tpu.memory_space<vmem>>, %arg20: memref<1x32xf32, #tpu.memory_space<vmem>>, %arg21: memref<32x16xf32, #tpu.memory_space<vmem>>, %arg22: memref<1x16xf32, #tpu.memory_space<vmem>>, %arg23: memref<32x48xf32, #tpu.memory_space<vmem>>, %arg24: memref<1x48xf32, #tpu.memory_space<vmem>>, %arg25: memref<1x17x16xf32, #tpu.memory_space<vmem>>, %arg26: memref<1x17x48xf32, #tpu.memory_space<vmem>>, %arg27: memref<17x32xf32, #tpu.memory_space<vmem>>, %arg28: memref<17x32xf32, #tpu.memory_space<vmem>>) attributes {dimension_semantics = [#tpu.dimension_semantics<parallel>], iteration_bounds = array<i64: 4>, scalar_prefetch = 0 : i64, scratch_operands = 2 : i64, tpu.core_type = #tpu.core_type<tc>, window_params = [{transform_indices = @transform_0, window_bounds = array<i64: 1, 16, 48>}, {pipeline_mode = #tpu.pipeline_mode<synchronous>, transform_indices = @transform_1, window_bounds = array<i64: 48, 32>}, {pipeline_mode = #tpu.pipeline_mode<synchronous>, transform_indices = @transform_2, window_bounds = array<i64: 1, 32>}, {pipeline_mode = #tpu.pipeline_mode<synchronous>, transform_indices = @transform_3, window_bounds = array<i64: 1, 32>}, {pipeline_mode = #tpu.pipeline_mode<synchronous>, transform_indices = @transform_4, window_bounds = array<i64: 1, 32>}, {pipeline_mode = #tpu.pipeline_mode<synchronous>, transform_indices = @transform_5, window_bounds = array<i64: 16, 32>}, {pipeline_mode = #tpu.pipeline_mode<synchronous>, transform_indices = @transform_6, window_bounds = array<i64: 1, 32>}, {pipeline_mode = #tpu.pipeline_mode<synchronous>, transform_indices = @transform_7, window_bounds = array<i64: 1, 32>}, {pipeline_mode = #tpu.pipeline_mode<synchronous>, transform_indices = @transform_8, window_bounds = array<i64: 32, 96>}, {pipeline_mode = #tpu.pipeline_mode<synchronous>, transform_indices = @transform_9, window_bounds = array<i64: 1, 96>}, {pipeline_mode = #tpu.pipeline_mode<synchronous>, transform_indices = @transform_10, window_bounds = array<i64: 32, 32>}, {pipeline_mode = #tpu.pipeline_mode<synchronous>, transform_indices = @transform_11, window_bounds = array<i64: 1, 32>}, {pipeline_mode = #tpu.pipeline_mode<synchronous>, transform_indices = @transform_12, window_bounds = array<i64: 1, 32>}, {pipeline_mode = #tpu.pipeline_mode<synchronous>, transform_indices = @transform_13, window_bounds = array<i64: 1, 32>}, {pipeline_mode = #tpu.pipeline_mode<synchronous>, transform_indices = @transform_14, window_bounds = array<i64: 32, 64>}, {pipeline_mode = #tpu.pipeline_mode<synchronous>, transform_indices = @transform_15, window_bounds = array<i64: 1, 64>}, {pipeline_mode = #tpu.pipeline_mode<synchronous>, transform_indices = @transform_16, window_bounds = array<i64: 64, 32>}, {pipeline_mode = #tpu.pipeline_mode<synchronous>, transform_indices = @transform_17, window_bounds = array<i64: 1, 32>}, {pipeline_mode = #tpu.pipeline_mode<synchronous>, transform_indices = @transform_18, window_bounds = array<i64: 1, 32>}, {pipeline_mode = #tpu.pipeline_mode<synchronous>, transform_indices = @transform_19, window_bounds = array<i64: 1, 32>}, {pipeline_mode = #tpu.pipeline_mode<synchronous>, transform_indices = @transform_20, window_bounds = array<i64: 32, 16>}, {pipeline_mode = #tpu.pipeline_mode<synchronous>, transform_indices = @transform_21, window_bounds = array<i64: 1, 16>}, {pipeline_mode = #tpu.pipeline_mode<synchronous>, transform_indices = @transform_22, window_bounds = array<i64: 32, 48>}, {pipeline_mode = #tpu.pipeline_mode<synchronous>, transform_indices = @transform_23, window_bounds = array<i64: 1, 48>}, {transform_indices = @transform_24, window_bounds = array<i64: 1, 17, 16>}, {transform_indices = @transform_25, window_bounds = array<i64: 1, 17, 48>}]} {
    %c0 = arith.constant 0 : index
    %c0_0 = arith.constant 0 : index
    %c0_1 = arith.constant 0 : index
    %0 = vector.load %arg1[%c0, %c0_0, %c0_1] : memref<1x16x48xf32, #tpu.memory_space<vmem>>, vector<1x16x48xf32>
    %1 = vector.shape_cast %0 : vector<1x16x48xf32> to vector<16x48xf32>
    %2 = arith.truncf %1 : vector<16x48xf32> to vector<16x48xbf16>
    %c0_2 = arith.constant 0 : index
    %c0_3 = arith.constant 0 : index
    %3 = vector.load %arg2[%c0_2, %c0_3] : memref<48x32xf32, #tpu.memory_space<vmem>>, vector<48x32xf32>
    %4 = arith.truncf %3 : vector<48x32xf32> to vector<48x32xbf16>
    %cst = arith.constant dense<0.000000e+00> : vector<16x32xf32>
    %5 = tpu.matmul %2, %4, %cst {dimension_numbers = #tpu.dot_dimension_numbers<[1], [0], [0], [1], [0, 0, 1, 1], [], []>} : vector<16x48xbf16>, vector<48x32xbf16>, vector<16x32xf32> -> vector<16x32xf32>
    %c0_4 = arith.constant 0 : index
    %c0_5 = arith.constant 0 : index
    %6 = vector.load %arg3[%c0_4, %c0_5] : memref<1x32xf32, #tpu.memory_space<vmem>>, vector<1x32xf32>
    %7 = vector.broadcast %6 : vector<1x32xf32> to vector<16x32xf32>
    %8 = arith.addf %5, %7 : vector<16x32xf32>
    %c0_6 = arith.constant 0 : index
    %c0_7 = arith.constant 0 : index
    %9 = vector.load %arg4[%c0_6, %c0_7] : memref<1x32xf32, #tpu.memory_space<vmem>>, vector<1x32xf32>
    %c0_8 = arith.constant 0 : index
    %c0_9 = arith.constant 0 : index
    %10 = vector.load %arg5[%c0_8, %c0_9] : memref<1x32xf32, #tpu.memory_space<vmem>>, vector<1x32xf32>
    %11 = arith.addf %9, %10 : vector<1x32xf32>
    %c0_10 = arith.constant 0 : index
    %c0_11 = arith.constant 0 : index
    %12 = vector.load %arg27[%c0_10, %c0_11] : memref<17x32xf32, #tpu.memory_space<vmem>>, vector<1x32xf32>
    tpu.vector_store %arg27[%c0_10, %c0_11], %11 {strides = array<i32>} : memref<17x32xf32, #tpu.memory_space<vmem>>, vector<1x32xf32>,
    %c0_12 = arith.constant 0 : index
    %c0_13 = arith.constant 0 : index
    %13 = vector.load %arg6[%c0_12, %c0_13] : memref<16x32xf32, #tpu.memory_space<vmem>>, vector<16x32xf32>
    %14 = arith.addf %8, %13 : vector<16x32xf32>
    %c1 = arith.constant 1 : index
    %c0_14 = arith.constant 0 : index
    %15 = vector.load %arg27[%c1, %c0_14] : memref<17x32xf32, #tpu.memory_space<vmem>>, vector<16x32xf32>
    tpu.vector_store %arg27[%c1, %c0_14], %14 {strides = array<i32>} : memref<17x32xf32, #tpu.memory_space<vmem>>, vector<16x32xf32>,
    %c0_15 = arith.constant 0 : index
    %c0_16 = arith.constant 0 : index
    %16 = vector.load %arg27[%c0_15, %c0_16] : memref<17x32xf32, #tpu.memory_space<vmem>>, vector<17x32xf32>
    %cst_17 = arith.constant dense<0.000000e+00> : vector<17xf32>
    %17 = vector.multi_reduction <add>, %16, %cst_17 [1] : vector<17x32xf32> to vector<17xf32>
    %18 = vector.shape_cast %17 : vector<17xf32> to vector<17x1xf32>
    %cst_18 = arith.constant 3.200000e+01 : f32
    %19 = vector.broadcast %cst_18 : f32 to vector<17x1xf32>
    %20 = arith.divf %18, %19 : vector<17x1xf32>
    %21 = vector.broadcast %20 : vector<17x1xf32> to vector<17x32xf32>
    %22 = arith.subf %16, %21 : vector<17x32xf32>
    %23 = arith.mulf %22, %22 : vector<17x32xf32>
    %cst_19 = arith.constant dense<0.000000e+00> : vector<17xf32>
    %24 = vector.multi_reduction <add>, %23, %cst_19 [1] : vector<17x32xf32> to vector<17xf32>
    %25 = vector.shape_cast %24 : vector<17xf32> to vector<17x1xf32>
    %cst_20 = arith.constant 3.200000e+01 : f32
    %26 = vector.broadcast %cst_20 : f32 to vector<17x1xf32>
    %27 = arith.divf %25, %26 : vector<17x1xf32>
    %28 = vector.broadcast %20 : vector<17x1xf32> to vector<17x32xf32>
    %29 = arith.subf %16, %28 : vector<17x32xf32>
    %cst_21 = arith.constant 9.99999997E-7 : f32
    %30 = vector.broadcast %cst_21 : f32 to vector<17x1xf32>
    %31 = arith.addf %27, %30 : vector<17x1xf32>
    %32 = math.rsqrt %31 : vector<17x1xf32>
    %33 = vector.broadcast %32 : vector<17x1xf32> to vector<17x32xf32>
    %34 = arith.mulf %29, %33 : vector<17x32xf32>
    %c0_22 = arith.constant 0 : index
    %c0_23 = arith.constant 0 : index
    %35 = vector.load %arg7[%c0_22, %c0_23] : memref<1x32xf32, #tpu.memory_space<vmem>>, vector<1x32xf32>
    %36 = vector.broadcast %35 : vector<1x32xf32> to vector<17x32xf32>
    %37 = arith.mulf %34, %36 : vector<17x32xf32>
    %c0_24 = arith.constant 0 : index
    %c0_25 = arith.constant 0 : index
    %38 = vector.load %arg8[%c0_24, %c0_25] : memref<1x32xf32, #tpu.memory_space<vmem>>, vector<1x32xf32>
    %39 = vector.broadcast %38 : vector<1x32xf32> to vector<17x32xf32>
    %40 = arith.addf %37, %39 : vector<17x32xf32>
    %41 = arith.truncf %40 : vector<17x32xf32> to vector<17x32xbf16>
    %c0_26 = arith.constant 0 : index
    %c0_27 = arith.constant 0 : index
    %42 = vector.load %arg9[%c0_26, %c0_27] : memref<32x96xf32, #tpu.memory_space<vmem>>, vector<32x96xf32>
    %43 = arith.truncf %42 : vector<32x96xf32> to vector<32x96xbf16>
    %cst_28 = arith.constant dense<0.000000e+00> : vector<17x96xf32>
    %44 = tpu.matmul %41, %43, %cst_28 {dimension_numbers = #tpu.dot_dimension_numbers<[1], [0], [0], [1], [0, 0, 1, 1], [], []>} : vector<17x32xbf16>, vector<32x96xbf16>, vector<17x96xf32> -> vector<17x96xf32>
    %c0_29 = arith.constant 0 : index
    %c0_30 = arith.constant 0 : index
    %45 = vector.load %arg10[%c0_29, %c0_30] : memref<1x96xf32, #tpu.memory_space<vmem>>, vector<1x96xf32>
    %46 = vector.broadcast %45 : vector<1x96xf32> to vector<17x96xf32>
    %47 = arith.addf %44, %46 : vector<17x96xf32>
    %48 = vector.extract_strided_slice %47 {offsets = [0, 0], sizes = [17, 8], strides = [1, 1]} : vector<17x96xf32> to vector<17x8xf32>
    %49 = vector.extract_strided_slice %47 {offsets = [0, 32], sizes = [17, 8], strides = [1, 1]} : vector<17x96xf32> to vector<17x8xf32>
    %50 = vector.extract_strided_slice %47 {offsets = [0, 64], sizes = [17, 8], strides = [1, 1]} : vector<17x96xf32> to vector<17x8xf32>
    %51 = arith.truncf %48 : vector<17x8xf32> to vector<17x8xbf16>
    %52 = arith.truncf %49 : vector<17x8xf32> to vector<17x8xbf16>
    %cst_31 = arith.constant dense<0.000000e+00> : vector<17x17xf32>
    %53 = tpu.matmul %51, %52, %cst_31 {dimension_numbers = #tpu.dot_dimension_numbers<[1], [1], [0], [0], [0, 0, 1, 0], [], []>} : vector<17x8xbf16>, vector<17x8xbf16>, vector<17x17xf32> -> vector<17x17xf32>
    %cst_32 = arith.constant 0.353553385 : f32
    %54 = vector.broadcast %cst_32 : f32 to vector<17x17xf32>
    %55 = arith.mulf %53, %54 : vector<17x17xf32>
    %cst_33 = arith.constant dense<0xFF800000> : vector<17xf32>
    %56 = vector.multi_reduction <maximumf>, %55, %cst_33 [1] : vector<17x17xf32> to vector<17xf32>
    %57 = vector.shape_cast %56 : vector<17xf32> to vector<17x1xf32>
    %58 = vector.broadcast %57 : vector<17x1xf32> to vector<17x17xf32>
    %59 = arith.subf %55, %58 : vector<17x17xf32>
    %60 = math.exp %59 : vector<17x17xf32>
    %cst_34 = arith.constant dense<0.000000e+00> : vector<17xf32>
    %61 = vector.multi_reduction <add>, %60, %cst_34 [1] : vector<17x17xf32> to vector<17xf32>
    %62 = vector.shape_cast %61 : vector<17xf32> to vector<17x1xf32>
    %63 = tpu.reciprocal %62 {approx = true} : vector<17x1xf32> -> vector<17x1xf32>
    %64 = vector.broadcast %63 : vector<17x1xf32> to vector<17x17xf32>
    %65 = arith.mulf %60, %64 : vector<17x17xf32>
    %66 = arith.truncf %65 : vector<17x17xf32> to vector<17x17xbf16>
    %67 = arith.truncf %50 : vector<17x8xf32> to vector<17x8xbf16>
    %cst_35 = arith.constant dense<0.000000e+00> : vector<17x8xf32>
    %68 = tpu.matmul %66, %67, %cst_35 {dimension_numbers = #tpu.dot_dimension_numbers<[1], [0], [0], [1], [0, 0, 1, 1], [], []>} : vector<17x17xbf16>, vector<17x8xbf16>, vector<17x8xf32> -> vector<17x8xf32>
    %c0_36 = arith.constant 0 : index
    %c0_37 = arith.constant 0 : index
    %69 = vector.load %arg28[%c0_36, %c0_37] : memref<17x32xf32, #tpu.memory_space<vmem>>, vector<17x8xf32>
    tpu.vector_store %arg28[%c0_36, %c0_37], %68 {strides = array<i32>} : memref<17x32xf32, #tpu.memory_space<vmem>>, vector<17x8xf32>,
    %70 = vector.extract_strided_slice %47 {offsets = [0, 8], sizes = [17, 8], strides = [1, 1]} : vector<17x96xf32> to vector<17x8xf32>
    %71 = vector.extract_strided_slice %47 {offsets = [0, 40], sizes = [17, 8], strides = [1, 1]} : vector<17x96xf32> to vector<17x8xf32>
    %72 = vector.extract_strided_slice %47 {offsets = [0, 72], sizes = [17, 8], strides = [1, 1]} : vector<17x96xf32> to vector<17x8xf32>
    %73 = arith.truncf %70 : vector<17x8xf32> to vector<17x8xbf16>
    %74 = arith.truncf %71 : vector<17x8xf32> to vector<17x8xbf16>
    %cst_38 = arith.constant dense<0.000000e+00> : vector<17x17xf32>
    %75 = tpu.matmul %73, %74, %cst_38 {dimension_numbers = #tpu.dot_dimension_numbers<[1], [1], [0], [0], [0, 0, 1, 0], [], []>} : vector<17x8xbf16>, vector<17x8xbf16>, vector<17x17xf32> -> vector<17x17xf32>
    %cst_39 = arith.constant 0.353553385 : f32
    %76 = vector.broadcast %cst_39 : f32 to vector<17x17xf32>
    %77 = arith.mulf %75, %76 : vector<17x17xf32>
    %cst_40 = arith.constant dense<0xFF800000> : vector<17xf32>
    %78 = vector.multi_reduction <maximumf>, %77, %cst_40 [1] : vector<17x17xf32> to vector<17xf32>
    %79 = vector.shape_cast %78 : vector<17xf32> to vector<17x1xf32>
    %80 = vector.broadcast %79 : vector<17x1xf32> to vector<17x17xf32>
    %81 = arith.subf %77, %80 : vector<17x17xf32>
    %82 = math.exp %81 : vector<17x17xf32>
    %cst_41 = arith.constant dense<0.000000e+00> : vector<17xf32>
    %83 = vector.multi_reduction <add>, %82, %cst_41 [1] : vector<17x17xf32> to vector<17xf32>
    %84 = vector.shape_cast %83 : vector<17xf32> to vector<17x1xf32>
    %85 = tpu.reciprocal %84 {approx = true} : vector<17x1xf32> -> vector<17x1xf32>
    %86 = vector.broadcast %85 : vector<17x1xf32> to vector<17x17xf32>
    %87 = arith.mulf %82, %86 : vector<17x17xf32>
    %88 = arith.truncf %87 : vector<17x17xf32> to vector<17x17xbf16>
    %89 = arith.truncf %72 : vector<17x8xf32> to vector<17x8xbf16>
    %cst_42 = arith.constant dense<0.000000e+00> : vector<17x8xf32>
    %90 = tpu.matmul %88, %89, %cst_42 {dimension_numbers = #tpu.dot_dimension_numbers<[1], [0], [0], [1], [0, 0, 1, 1], [], []>} : vector<17x17xbf16>, vector<17x8xbf16>, vector<17x8xf32> -> vector<17x8xf32>
    %c0_43 = arith.constant 0 : index
    %c8 = arith.constant 8 : index
    %91 = vector.load %arg28[%c0_43, %c8] : memref<17x32xf32, #tpu.memory_space<vmem>>, vector<17x8xf32>
    tpu.vector_store %arg28[%c0_43, %c8], %90 {strides = array<i32>} : memref<17x32xf32, #tpu.memory_space<vmem>>, vector<17x8xf32>,
    %92 = vector.extract_strided_slice %47 {offsets = [0, 16], sizes = [17, 8], strides = [1, 1]} : vector<17x96xf32> to vector<17x8xf32>
    %93 = vector.extract_strided_slice %47 {offsets = [0, 48], sizes = [17, 8], strides = [1, 1]} : vector<17x96xf32> to vector<17x8xf32>
    %94 = vector.extract_strided_slice %47 {offsets = [0, 80], sizes = [17, 8], strides = [1, 1]} : vector<17x96xf32> to vector<17x8xf32>
    %95 = arith.truncf %92 : vector<17x8xf32> to vector<17x8xbf16>
    %96 = arith.truncf %93 : vector<17x8xf32> to vector<17x8xbf16>
    %cst_44 = arith.constant dense<0.000000e+00> : vector<17x17xf32>
    %97 = tpu.matmul %95, %96, %cst_44 {dimension_numbers = #tpu.dot_dimension_numbers<[1], [1], [0], [0], [0, 0, 1, 0], [], []>} : vector<17x8xbf16>, vector<17x8xbf16>, vector<17x17xf32> -> vector<17x17xf32>
    %cst_45 = arith.constant 0.353553385 : f32
    %98 = vector.broadcast %cst_45 : f32 to vector<17x17xf32>
    %99 = arith.mulf %97, %98 : vector<17x17xf32>
    %cst_46 = arith.constant dense<0xFF800000> : vector<17xf32>
    %100 = vector.multi_reduction <maximumf>, %99, %cst_46 [1] : vector<17x17xf32> to vector<17xf32>
    %101 = vector.shape_cast %100 : vector<17xf32> to vector<17x1xf32>
    %102 = vector.broadcast %101 : vector<17x1xf32> to vector<17x17xf32>
    %103 = arith.subf %99, %102 : vector<17x17xf32>
    %104 = math.exp %103 : vector<17x17xf32>
    %cst_47 = arith.constant dense<0.000000e+00> : vector<17xf32>
    %105 = vector.multi_reduction <add>, %104, %cst_47 [1] : vector<17x17xf32> to vector<17xf32>
    %106 = vector.shape_cast %105 : vector<17xf32> to vector<17x1xf32>
    %107 = tpu.reciprocal %106 {approx = true} : vector<17x1xf32> -> vector<17x1xf32>
    %108 = vector.broadcast %107 : vector<17x1xf32> to vector<17x17xf32>
    %109 = arith.mulf %104, %108 : vector<17x17xf32>
    %110 = arith.truncf %109 : vector<17x17xf32> to vector<17x17xbf16>
    %111 = arith.truncf %94 : vector<17x8xf32> to vector<17x8xbf16>
    %cst_48 = arith.constant dense<0.000000e+00> : vector<17x8xf32>
    %112 = tpu.matmul %110, %111, %cst_48 {dimension_numbers = #tpu.dot_dimension_numbers<[1], [0], [0], [1], [0, 0, 1, 1], [], []>} : vector<17x17xbf16>, vector<17x8xbf16>, vector<17x8xf32> -> vector<17x8xf32>
    %c0_49 = arith.constant 0 : index
    %c16 = arith.constant 16 : index
    %113 = vector.load %arg28[%c0_49, %c16] : memref<17x32xf32, #tpu.memory_space<vmem>>, vector<17x8xf32>
    tpu.vector_store %arg28[%c0_49, %c16], %112 {strides = array<i32>} : memref<17x32xf32, #tpu.memory_space<vmem>>, vector<17x8xf32>,
    %114 = vector.extract_strided_slice %47 {offsets = [0, 24], sizes = [17, 8], strides = [1, 1]} : vector<17x96xf32> to vector<17x8xf32>
    %115 = vector.extract_strided_slice %47 {offsets = [0, 56], sizes = [17, 8], strides = [1, 1]} : vector<17x96xf32> to vector<17x8xf32>
    %116 = vector.extract_strided_slice %47 {offsets = [0, 88], sizes = [17, 8], strides = [1, 1]} : vector<17x96xf32> to vector<17x8xf32>
    %117 = arith.truncf %114 : vector<17x8xf32> to vector<17x8xbf16>
    %118 = arith.truncf %115 : vector<17x8xf32> to vector<17x8xbf16>
    %cst_50 = arith.constant dense<0.000000e+00> : vector<17x17xf32>
    %119 = tpu.matmul %117, %118, %cst_50 {dimension_numbers = #tpu.dot_dimension_numbers<[1], [1], [0], [0], [0, 0, 1, 0], [], []>} : vector<17x8xbf16>, vector<17x8xbf16>, vector<17x17xf32> -> vector<17x17xf32>
    %cst_51 = arith.constant 0.353553385 : f32
    %120 = vector.broadcast %cst_51 : f32 to vector<17x17xf32>
    %121 = arith.mulf %119, %120 : vector<17x17xf32>
    %cst_52 = arith.constant dense<0xFF800000> : vector<17xf32>
    %122 = vector.multi_reduction <maximumf>, %121, %cst_52 [1] : vector<17x17xf32> to vector<17xf32>
    %123 = vector.shape_cast %122 : vector<17xf32> to vector<17x1xf32>
    %124 = vector.broadcast %123 : vector<17x1xf32> to vector<17x17xf32>
    %125 = arith.subf %121, %124 : vector<17x17xf32>
    %126 = math.exp %125 : vector<17x17xf32>
    %cst_53 = arith.constant dense<0.000000e+00> : vector<17xf32>
    %127 = vector.multi_reduction <add>, %126, %cst_53 [1] : vector<17x17xf32> to vector<17xf32>
    %128 = vector.shape_cast %127 : vector<17xf32> to vector<17x1xf32>
    %129 = tpu.reciprocal %128 {approx = true} : vector<17x1xf32> -> vector<17x1xf32>
    %130 = vector.broadcast %129 : vector<17x1xf32> to vector<17x17xf32>
    %131 = arith.mulf %126, %130 : vector<17x17xf32>
    %132 = arith.truncf %131 : vector<17x17xf32> to vector<17x17xbf16>
    %133 = arith.truncf %116 : vector<17x8xf32> to vector<17x8xbf16>
    %cst_54 = arith.constant dense<0.000000e+00> : vector<17x8xf32>
    %134 = tpu.matmul %132, %133, %cst_54 {dimension_numbers = #tpu.dot_dimension_numbers<[1], [0], [0], [1], [0, 0, 1, 1], [], []>} : vector<17x17xbf16>, vector<17x8xbf16>, vector<17x8xf32> -> vector<17x8xf32>
    %c0_55 = arith.constant 0 : index
    %c24 = arith.constant 24 : index
    %135 = vector.load %arg28[%c0_55, %c24] : memref<17x32xf32, #tpu.memory_space<vmem>>, vector<17x8xf32>
    tpu.vector_store %arg28[%c0_55, %c24], %134 {strides = array<i32>} : memref<17x32xf32, #tpu.memory_space<vmem>>, vector<17x8xf32>,
    %c0_56 = arith.constant 0 : index
    %c0_57 = arith.constant 0 : index
    %136 = vector.load %arg28[%c0_56, %c0_57] : memref<17x32xf32, #tpu.memory_space<vmem>>, vector<17x32xf32>
    %137 = arith.truncf %136 : vector<17x32xf32> to vector<17x32xbf16>
    %c0_58 = arith.constant 0 : index
    %c0_59 = arith.constant 0 : index
    %138 = vector.load %arg11[%c0_58, %c0_59] : memref<32x32xf32, #tpu.memory_space<vmem>>, vector<32x32xf32>
    %139 = arith.truncf %138 : vector<32x32xf32> to vector<32x32xbf16>
    %cst_60 = arith.constant dense<0.000000e+00> : vector<17x32xf32>
    %140 = tpu.matmul %137, %139, %cst_60 {dimension_numbers = #tpu.dot_dimension_numbers<[1], [0], [0], [1], [0, 0, 1, 1], [], []>} : vector<17x32xbf16>, vector<32x32xbf16>, vector<17x32xf32> -> vector<17x32xf32>
    %c0_61 = arith.constant 0 : index
    %c0_62 = arith.constant 0 : index
    %141 = vector.load %arg12[%c0_61, %c0_62] : memref<1x32xf32, #tpu.memory_space<vmem>>, vector<1x32xf32>
    %142 = vector.broadcast %141 : vector<1x32xf32> to vector<17x32xf32>
    %143 = arith.addf %140, %142 : vector<17x32xf32>
    %144 = arith.addf %16, %143 : vector<17x32xf32>
    %cst_63 = arith.constant dense<0.000000e+00> : vector<17xf32>
    %145 = vector.multi_reduction <add>, %144, %cst_63 [1] : vector<17x32xf32> to vector<17xf32>
    %146 = vector.shape_cast %145 : vector<17xf32> to vector<17x1xf32>
    %cst_64 = arith.constant 3.200000e+01 : f32
    %147 = vector.broadcast %cst_64 : f32 to vector<17x1xf32>
    %148 = arith.divf %146, %147 : vector<17x1xf32>
    %149 = vector.broadcast %148 : vector<17x1xf32> to vector<17x32xf32>
    %150 = arith.subf %144, %149 : vector<17x32xf32>
    %151 = arith.mulf %150, %150 : vector<17x32xf32>
    %cst_65 = arith.constant dense<0.000000e+00> : vector<17xf32>
    %152 = vector.multi_reduction <add>, %151, %cst_65 [1] : vector<17x32xf32> to vector<17xf32>
    %153 = vector.shape_cast %152 : vector<17xf32> to vector<17x1xf32>
    %cst_66 = arith.constant 3.200000e+01 : f32
    %154 = vector.broadcast %cst_66 : f32 to vector<17x1xf32>
    %155 = arith.divf %153, %154 : vector<17x1xf32>
    %156 = vector.broadcast %148 : vector<17x1xf32> to vector<17x32xf32>
    %157 = arith.subf %144, %156 : vector<17x32xf32>
    %cst_67 = arith.constant 9.99999997E-7 : f32
    %158 = vector.broadcast %cst_67 : f32 to vector<17x1xf32>
    %159 = arith.addf %155, %158 : vector<17x1xf32>
    %160 = math.rsqrt %159 : vector<17x1xf32>
    %161 = vector.broadcast %160 : vector<17x1xf32> to vector<17x32xf32>
    %162 = arith.mulf %157, %161 : vector<17x32xf32>
    %c0_68 = arith.constant 0 : index
    %c0_69 = arith.constant 0 : index
    %163 = vector.load %arg13[%c0_68, %c0_69] : memref<1x32xf32, #tpu.memory_space<vmem>>, vector<1x32xf32>
    %164 = vector.broadcast %163 : vector<1x32xf32> to vector<17x32xf32>
    %165 = arith.mulf %162, %164 : vector<17x32xf32>
    %c0_70 = arith.constant 0 : index
    %c0_71 = arith.constant 0 : index
    %166 = vector.load %arg14[%c0_70, %c0_71] : memref<1x32xf32, #tpu.memory_space<vmem>>, vector<1x32xf32>
    %167 = vector.broadcast %166 : vector<1x32xf32> to vector<17x32xf32>
    %168 = arith.addf %165, %167 : vector<17x32xf32>
    %169 = arith.truncf %168 : vector<17x32xf32> to vector<17x32xbf16>
    %c0_72 = arith.constant 0 : index
    %c0_73 = arith.constant 0 : index
    %170 = vector.load %arg15[%c0_72, %c0_73] : memref<32x64xf32, #tpu.memory_space<vmem>>, vector<32x64xf32>
    %171 = arith.truncf %170 : vector<32x64xf32> to vector<32x64xbf16>
    %cst_74 = arith.constant dense<0.000000e+00> : vector<17x64xf32>
    %172 = tpu.matmul %169, %171, %cst_74 {dimension_numbers = #tpu.dot_dimension_numbers<[1], [0], [0], [1], [0, 0, 1, 1], [], []>} : vector<17x32xbf16>, vector<32x64xbf16>, vector<17x64xf32> -> vector<17x64xf32>
    %c0_75 = arith.constant 0 : index
    %c0_76 = arith.constant 0 : index
    %173 = vector.load %arg16[%c0_75, %c0_76] : memref<1x64xf32, #tpu.memory_space<vmem>>, vector<1x64xf32>
    %174 = vector.broadcast %173 : vector<1x64xf32> to vector<17x64xf32>
    %175 = arith.addf %172, %174 : vector<17x64xf32>
    %176 = arith.mulf %175, %175 : vector<17x64xf32>
    %177 = arith.mulf %175, %176 : vector<17x64xf32>
    %cst_77 = arith.constant 4.471500e-02 : f32
    %178 = vector.broadcast %cst_77 : f32 to vector<17x64xf32>
    %179 = arith.mulf %178, %177 : vector<17x64xf32>
    %180 = arith.addf %175, %179 : vector<17x64xf32>
    %cst_78 = arith.constant 0.797884583 : f32
    %181 = vector.broadcast %cst_78 : f32 to vector<17x64xf32>
    %182 = arith.mulf %181, %180 : vector<17x64xf32>
    %183 = math.tanh %182 : vector<17x64xf32>
    %cst_79 = arith.constant 1.000000e+00 : f32
    %184 = vector.broadcast %cst_79 : f32 to vector<17x64xf32>
    %185 = arith.addf %184, %183 : vector<17x64xf32>
    %cst_80 = arith.constant 5.000000e-01 : f32
    %186 = vector.broadcast %cst_80 : f32 to vector<17x64xf32>
    %187 = arith.mulf %186, %185 : vector<17x64xf32>
    %188 = arith.mulf %175, %187 : vector<17x64xf32>
    %189 = arith.truncf %188 : vector<17x64xf32> to vector<17x64xbf16>
    %c0_81 = arith.constant 0 : index
    %c0_82 = arith.constant 0 : index
    %190 = vector.load %arg17[%c0_81, %c0_82] : memref<64x32xf32, #tpu.memory_space<vmem>>, vector<64x32xf32>
    %191 = arith.truncf %190 : vector<64x32xf32> to vector<64x32xbf16>
    %cst_83 = arith.constant dense<0.000000e+00> : vector<17x32xf32>
    %192 = tpu.matmul %189, %191, %cst_83 {dimension_numbers = #tpu.dot_dimension_numbers<[1], [0], [0], [1], [0, 0, 1, 1], [], []>} : vector<17x64xbf16>, vector<64x32xbf16>, vector<17x32xf32> -> vector<17x32xf32>
    %c0_84 = arith.constant 0 : index
    %c0_85 = arith.constant 0 : index
    %193 = vector.load %arg18[%c0_84, %c0_85] : memref<1x32xf32, #tpu.memory_space<vmem>>, vector<1x32xf32>
    %194 = vector.broadcast %193 : vector<1x32xf32> to vector<17x32xf32>
    %195 = arith.addf %192, %194 : vector<17x32xf32>
    %196 = arith.addf %144, %195 : vector<17x32xf32>
    %cst_86 = arith.constant dense<0.000000e+00> : vector<17xf32>
    %197 = vector.multi_reduction <add>, %196, %cst_86 [1] : vector<17x32xf32> to vector<17xf32>
    %198 = vector.shape_cast %197 : vector<17xf32> to vector<17x1xf32>
    %cst_87 = arith.constant 3.200000e+01 : f32
    %199 = vector.broadcast %cst_87 : f32 to vector<17x1xf32>
    %200 = arith.divf %198, %199 : vector<17x1xf32>
    %201 = vector.broadcast %200 : vector<17x1xf32> to vector<17x32xf32>
    %202 = arith.subf %196, %201 : vector<17x32xf32>
    %203 = arith.mulf %202, %202 : vector<17x32xf32>
    %cst_88 = arith.constant dense<0.000000e+00> : vector<17xf32>
    %204 = vector.multi_reduction <add>, %203, %cst_88 [1] : vector<17x32xf32> to vector<17xf32>
    %205 = vector.shape_cast %204 : vector<17xf32> to vector<17x1xf32>
    %cst_89 = arith.constant 3.200000e+01 : f32
    %206 = vector.broadcast %cst_89 : f32 to vector<17x1xf32>
    %207 = arith.divf %205, %206 : vector<17x1xf32>
    %208 = vector.broadcast %200 : vector<17x1xf32> to vector<17x32xf32>
    %209 = arith.subf %196, %208 : vector<17x32xf32>
    %cst_90 = arith.constant 9.99999997E-7 : f32
    %210 = vector.broadcast %cst_90 : f32 to vector<17x1xf32>
    %211 = arith.addf %207, %210 : vector<17x1xf32>
    %212 = math.rsqrt %211 : vector<17x1xf32>
    %213 = vector.broadcast %212 : vector<17x1xf32> to vector<17x32xf32>
    %214 = arith.mulf %209, %213 : vector<17x32xf32>
    %c0_91 = arith.constant 0 : index
    %c0_92 = arith.constant 0 : index
    %215 = vector.load %arg19[%c0_91, %c0_92] : memref<1x32xf32, #tpu.memory_space<vmem>>, vector<1x32xf32>
    %216 = vector.broadcast %215 : vector<1x32xf32> to vector<17x32xf32>
    %217 = arith.mulf %214, %216 : vector<17x32xf32>
    %c0_93 = arith.constant 0 : index
    %c0_94 = arith.constant 0 : index
    %218 = vector.load %arg20[%c0_93, %c0_94] : memref<1x32xf32, #tpu.memory_space<vmem>>, vector<1x32xf32>
    %219 = vector.broadcast %218 : vector<1x32xf32> to vector<17x32xf32>
    %220 = arith.addf %217, %219 : vector<17x32xf32>
    %221 = arith.truncf %220 : vector<17x32xf32> to vector<17x32xbf16>
    %c0_95 = arith.constant 0 : index
    %c0_96 = arith.constant 0 : index
    %222 = vector.load %arg21[%c0_95, %c0_96] : memref<32x16xf32, #tpu.memory_space<vmem>>, vector<32x16xf32>
    %223 = arith.truncf %222 : vector<32x16xf32> to vector<32x16xbf16>
    %cst_97 = arith.constant dense<0.000000e+00> : vector<17x16xf32>
    %224 = tpu.matmul %221, %223, %cst_97 {dimension_numbers = #tpu.dot_dimension_numbers<[1], [0], [0], [1], [0, 0, 1, 1], [], []>} : vector<17x32xbf16>, vector<32x16xbf16>, vector<17x16xf32> -> vector<17x16xf32>
    %c0_98 = arith.constant 0 : index
    %c0_99 = arith.constant 0 : index
    %225 = vector.load %arg22[%c0_98, %c0_99] : memref<1x16xf32, #tpu.memory_space<vmem>>, vector<1x16xf32>
    %226 = vector.broadcast %225 : vector<1x16xf32> to vector<17x16xf32>
    %227 = arith.addf %224, %226 : vector<17x16xf32>
    %c0_100 = arith.constant 0 : index
    %c0_101 = arith.constant 0 : index
    %c0_102 = arith.constant 0 : index
    %228 = vector.load %arg25[%c0_100, %c0_101, %c0_102] : memref<1x17x16xf32, #tpu.memory_space<vmem>>, vector<1x17x16xf32>
    %229 = vector.shape_cast %228 : vector<1x17x16xf32> to vector<17x16xf32>
    %230 = vector.shape_cast %227 : vector<17x16xf32> to vector<1x17x16xf32>
    tpu.vector_store %arg25[%c0_100, %c0_101, %c0_102], %230 {strides = array<i32>} : memref<1x17x16xf32, #tpu.memory_space<vmem>>, vector<1x17x16xf32>,
    %231 = arith.truncf %220 : vector<17x32xf32> to vector<17x32xbf16>
    %c0_103 = arith.constant 0 : index
    %c0_104 = arith.constant 0 : index
    %232 = vector.load %arg23[%c0_103, %c0_104] : memref<32x48xf32, #tpu.memory_space<vmem>>, vector<32x48xf32>
    %233 = arith.truncf %232 : vector<32x48xf32> to vector<32x48xbf16>
    %cst_105 = arith.constant dense<0.000000e+00> : vector<17x48xf32>
    %234 = tpu.matmul %231, %233, %cst_105 {dimension_numbers = #tpu.dot_dimension_numbers<[1], [0], [0], [1], [0, 0, 1, 1], [], []>} : vector<17x32xbf16>, vector<32x48xbf16>, vector<17x48xf32> -> vector<17x48xf32>
    %c0_106 = arith.constant 0 : index
    %c0_107 = arith.constant 0 : index
    %235 = vector.load %arg24[%c0_106, %c0_107] : memref<1x48xf32, #tpu.memory_space<vmem>>, vector<1x48xf32>
    %236 = vector.broadcast %235 : vector<1x48xf32> to vector<17x48xf32>
    %237 = arith.addf %234, %236 : vector<17x48xf32>
    %c0_108 = arith.constant 0 : index
    %c0_109 = arith.constant 0 : index
    %c0_110 = arith.constant 0 : index
    %238 = vector.load %arg26[%c0_108, %c0_109, %c0_110] : memref<1x17x48xf32, #tpu.memory_space<vmem>>, vector<1x17x48xf32>
    %239 = vector.shape_cast %238 : vector<1x17x48xf32> to vector<17x48xf32>
    %240 = vector.shape_cast %237 : vector<17x48xf32> to vector<1x17x48xf32>
    tpu.vector_store %arg26[%c0_108, %c0_109, %c0_110], %240 {strides = array<i32>} : memref<1x17x48xf32, #tpu.memory_space<vmem>>, vector<1x17x48xf32>,
    return
  }
  func.func @transform_0(%arg0: i32) -> (i32, i32, i32) {
    %c0_i32 = arith.constant 0 : i32
    %c0_i32_0 = arith.constant 0 : i32
    %c0_i32_1 = arith.constant 0 : i32
    return %arg0, %c0_i32, %c0_i32_0 : i32, i32, i32
  }
  func.func @transform_1(%arg0: i32) -> (i32, i32) {
    %c0_i32 = arith.constant 0 : i32
    %c0_i32_0 = arith.constant 0 : i32
    %c0_i32_1 = arith.constant 0 : i32
    return %c0_i32, %c0_i32_0 : i32, i32
  }
  func.func @transform_2(%arg0: i32) -> (i32, i32) {
    %c0_i32 = arith.constant 0 : i32
    %c0_i32_0 = arith.constant 0 : i32
    %c0_i32_1 = arith.constant 0 : i32
    return %c0_i32, %c0_i32_0 : i32, i32
  }
  func.func @transform_3(%arg0: i32) -> (i32, i32) {
    %c0_i32 = arith.constant 0 : i32
    %c0_i32_0 = arith.constant 0 : i32
    %c0_i32_1 = arith.constant 0 : i32
    return %c0_i32, %c0_i32_0 : i32, i32
  }
  func.func @transform_4(%arg0: i32) -> (i32, i32) {
    %c0_i32 = arith.constant 0 : i32
    %c0_i32_0 = arith.constant 0 : i32
    %c0_i32_1 = arith.constant 0 : i32
    return %c0_i32, %c0_i32_0 : i32, i32
  }
  func.func @transform_5(%arg0: i32) -> (i32, i32) {
    %c0_i32 = arith.constant 0 : i32
    %c0_i32_0 = arith.constant 0 : i32
    %c0_i32_1 = arith.constant 0 : i32
    return %c0_i32, %c0_i32_0 : i32, i32
  }
  func.func @transform_6(%arg0: i32) -> (i32, i32) {
    %c0_i32 = arith.constant 0 : i32
    %c0_i32_0 = arith.constant 0 : i32
    %c0_i32_1 = arith.constant 0 : i32
    return %c0_i32, %c0_i32_0 : i32, i32
  }
  func.func @transform_7(%arg0: i32) -> (i32, i32) {
    %c0_i32 = arith.constant 0 : i32
    %c0_i32_0 = arith.constant 0 : i32
    %c0_i32_1 = arith.constant 0 : i32
    return %c0_i32, %c0_i32_0 : i32, i32
  }
  func.func @transform_8(%arg0: i32) -> (i32, i32) {
    %c0_i32 = arith.constant 0 : i32
    %c0_i32_0 = arith.constant 0 : i32
    %c0_i32_1 = arith.constant 0 : i32
    return %c0_i32, %c0_i32_0 : i32, i32
  }
  func.func @transform_9(%arg0: i32) -> (i32, i32) {
    %c0_i32 = arith.constant 0 : i32
    %c0_i32_0 = arith.constant 0 : i32
    %c0_i32_1 = arith.constant 0 : i32
    return %c0_i32, %c0_i32_0 : i32, i32
  }
  func.func @transform_10(%arg0: i32) -> (i32, i32) {
    %c0_i32 = arith.constant 0 : i32
    %c0_i32_0 = arith.constant 0 : i32
    %c0_i32_1 = arith.constant 0 : i32
    return %c0_i32, %c0_i32_0 : i32, i32
  }
  func.func @transform_11(%arg0: i32) -> (i32, i32) {
    %c0_i32 = arith.constant 0 : i32
    %c0_i32_0 = arith.constant 0 : i32
    %c0_i32_1 = arith.constant 0 : i32
    return %c0_i32, %c0_i32_0 : i32, i32
  }
  func.func @transform_12(%arg0: i32) -> (i32, i32) {
    %c0_i32 = arith.constant 0 : i32
    %c0_i32_0 = arith.constant 0 : i32
    %c0_i32_1 = arith.constant 0 : i32
    return %c0_i32, %c0_i32_0 : i32, i32
  }
  func.func @transform_13(%arg0: i32) -> (i32, i32) {
    %c0_i32 = arith.constant 0 : i32
    %c0_i32_0 = arith.constant 0 : i32
    %c0_i32_1 = arith.constant 0 : i32
    return %c0_i32, %c0_i32_0 : i32, i32
  }
  func.func @transform_14(%arg0: i32) -> (i32, i32) {
    %c0_i32 = arith.constant 0 : i32
    %c0_i32_0 = arith.constant 0 : i32
    %c0_i32_1 = arith.constant 0 : i32
    return %c0_i32, %c0_i32_0 : i32, i32
  }
  func.func @transform_15(%arg0: i32) -> (i32, i32) {
    %c0_i32 = arith.constant 0 : i32
    %c0_i32_0 = arith.constant 0 : i32
    %c0_i32_1 = arith.constant 0 : i32
    return %c0_i32, %c0_i32_0 : i32, i32
  }
  func.func @transform_16(%arg0: i32) -> (i32, i32) {
    %c0_i32 = arith.constant 0 : i32
    %c0_i32_0 = arith.constant 0 : i32
    %c0_i32_1 = arith.constant 0 : i32
    return %c0_i32, %c0_i32_0 : i32, i32
  }
  func.func @transform_17(%arg0: i32) -> (i32, i32) {
    %c0_i32 = arith.constant 0 : i32
    %c0_i32_0 = arith.constant 0 : i32
    %c0_i32_1 = arith.constant 0 : i32
    return %c0_i32, %c0_i32_0 : i32, i32
  }
  func.func @transform_18(%arg0: i32) -> (i32, i32) {
    %c0_i32 = arith.constant 0 : i32
    %c0_i32_0 = arith.constant 0 : i32
    %c0_i32_1 = arith.constant 0 : i32
    return %c0_i32, %c0_i32_0 : i32, i32
  }
  func.func @transform_19(%arg0: i32) -> (i32, i32) {
    %c0_i32 = arith.constant 0 : i32
    %c0_i32_0 = arith.constant 0 : i32
    %c0_i32_1 = arith.constant 0 : i32
    return %c0_i32, %c0_i32_0 : i32, i32
  }
  func.func @transform_20(%arg0: i32) -> (i32, i32) {
    %c0_i32 = arith.constant 0 : i32
    %c0_i32_0 = arith.constant 0 : i32
    %c0_i32_1 = arith.constant 0 : i32
    return %c0_i32, %c0_i32_0 : i32, i32
  }
  func.func @transform_21(%arg0: i32) -> (i32, i32) {
    %c0_i32 = arith.constant 0 : i32
    %c0_i32_0 = arith.constant 0 : i32
    %c0_i32_1 = arith.constant 0 : i32
    return %c0_i32, %c0_i32_0 : i32, i32
  }
  func.func @transform_22(%arg0: i32) -> (i32, i32) {
    %c0_i32 = arith.constant 0 : i32
    %c0_i32_0 = arith.constant 0 : i32
    %c0_i32_1 = arith.constant 0 : i32
    return %c0_i32, %c0_i32_0 : i32, i32
  }
  func.func @transform_23(%arg0: i32) -> (i32, i32) {
    %c0_i32 = arith.constant 0 : i32
    %c0_i32_0 = arith.constant 0 : i32
    %c0_i32_1 = arith.constant 0 : i32
    return %c0_i32, %c0_i32_0 : i32, i32
  }
  func.func @transform_24(%arg0: i32) -> (i32, i32, i32) {
    %c0_i32 = arith.constant 0 : i32
    %c0_i32_0 = arith.constant 0 : i32
    %c0_i32_1 = arith.constant 0 : i32
    return %arg0, %c0_i32, %c0_i32_0 : i32, i32, i32
  }
  func.func @transform_25(%arg0: i32) -> (i32, i32, i32) {
    %c0_i32 = arith.constant 0 : i32
    %c0_i32_0 = arith.constant 0 : i32
    %c0_i32_1 = arith.constant 0 : i32
    return %arg0, %c0_i32, %c0_i32_0 : i32, i32, i32
  }
}

</mosaic_0001>

<bundles_post_ra>
// kernel: tpu_custom_call.1
= control target key start
LH: loop header
LB: loop body
LE: loop exit
PB: predicated region body
PF: predicated region fallthrough
CT: control target
= control target key end

     0   :  { %s4185_s0 = inlined_call_operand.vmem [shape: f32[4,16,48], index: 0, kind: input, shape index: {}]   ;;  %s4186_s1 = inlined_call_operand.vmem [shape: f32[48,32], index: 1, kind: input, shape index: {}]   ;;  %s4187_s2 = inlined_call_operand.hbm [shape: f32[1,32], index: 2, kind: input, shape index: {}]   ;;  %s4188_s3 = inlined_call_operand.hbm [shape: f32[1,32], index: 3, kind: input, shape index: {}]   ;;  %s4189_s4 = inlined_call_operand.hbm [shape: f32[1,32], index: 4, kind: input, shape index: {}]   ;;  %s4190_s5 = inlined_call_operand.hbm [shape: f32[16,32], index: 5, kind: input, shape index: {}]   ;;  %s4191_s6 = inlined_call_operand.hbm [shape: f32[1,32], index: 6, kind: input, shape index: {}]   ;;  %s4192_s7 = inlined_call_operand.hbm [shape: f32[1,32], index: 7, kind: input, shape index: {}]   ;;  %s4193_s8 = inlined_call_operand.vmem [shape: f32[32,96], index: 8, kind: input, shape index: {}]   ;;  %s4194_s9 = inlined_call_operand.hbm [shape: f32[1,96], index: 9, kind: input, shape index: {}]   ;;  %s4195_s10 = inlined_call_operand.vmem [shape: f32[32,32], index: 10, kind: input, shape index: {}]   ;;  %s4196_s11 = inlined_call_operand.hbm [shape: f32[1,32], index: 11, kind: input, shape index: {}]   ;;  %s4197_s12 = inlined_call_operand.hbm [shape: f32[1,32], index: 12, kind: input, shape index: {}]   ;;  %s4198_s13 = inlined_call_operand.hbm [shape: f32[1,32], index: 13, kind: input, shape index: {}]   ;;  %s4199_s14 = inlined_call_operand.vmem [shape: f32[32,64], index: 14, kind: input, shape index: {}]   ;;  %s4200_s15 = inlined_call_operand.hbm [shape: f32[1,64], index: 15, kind: input, shape index: {}]   ;;  %s4201_s16 = inlined_call_operand.vmem [shape: f32[64,32], index: 16, kind: input, shape index: {}]   ;;  %s4202_s17 = inlined_call_operand.hbm [shape: f32[1,32], index: 17, kind: input, shape index: {}]   ;;  %s4203_s18 = inlined_call_operand.hbm [shape: f32[1,32], index: 18, kind: input, shape index: {}]   ;;  %s4204_s19 = inlined_call_operand.hbm [shape: f32[1,32], index: 19, kind: input, shape index: {}]   ;;  %s4205_s20 = inlined_call_operand.vmem [shape: f32[32,16], index: 20, kind: input, shape index: {}]   ;;  %s4206_s21 = inlined_call_operand.vmem [shape: f32[1,16], index: 21, kind: input, shape index: {}]   ;;  %s4207_s22 = inlined_call_operand.vmem [shape: f32[32,48], index: 22, kind: input, shape index: {}]   ;;  %s4208_s23 = inlined_call_operand.vmem [shape: f32[1,48], index: 23, kind: input, shape index: {}]   ;;  %s4209_s24 = inlined_call_operand.vmem [shape: f32[4,17,16], index: 24, kind: output, shape index: {0}]   ;;  %s4210_s25 = inlined_call_operand.vmem [shape: f32[4,17,48], index: 25, kind: output, shape index: {1}]  }
   0x1   :  { %4215 = sst [smem:[#allocation35_spill]] %s4185_s0 }
   0x2   :  { %4216 = sst [smem:[#allocation36_spill]] %s4186_s1 }
   0x3   :  { %4217 = sst [smem:[#allocation37_spill]] %s4187_s2 }
   0x4   :  { %4218 = sst [smem:[#allocation38_spill]] %s4188_s3 }
   0x5   :  { %4219 = sst [smem:[#allocation39_spill]] %s4189_s4 }
   0x6   :  { %4220 = sst [smem:[#allocation40_spill]] %s4190_s5 }
   0x7   :  { %4221 = sst [smem:[#allocation41_spill]] %s4191_s6 }
   0x8   :  { %4222 = sst [smem:[#allocation42_spill]] %s4192_s7 }
   0x9   :  { %4223 = sst [smem:[#allocation43_spill]] %s4193_s8 }
   0xa   :  { %4224 = sst [smem:[#allocation44_spill]] %s4194_s9 }
   0xb   :  { %4225 = sst [smem:[#allocation45_spill]] %s4208_s23 }
   0xc   :  { %4226 = sst [smem:[#allocation46_spill]] %s4210_s25 }
   0xd   :  { %31 = vsyncpa [#allocation5], 0 }
   0xe   :  { %32 = vsyncpa [#allocation7], 0 }
   0xf   :  { %33 = vsyncpa [#allocation10], 0 }
  0x10   :  { %34 = vsyncpa [#allocation13], 0 }
  0x11   :  { %35 = vsyncpa [#allocation16], 0 }
  0x12   :  { %36 = vsyncpa [#allocation19], 0 }
  0x13   :  { %37 = vsyncpa [#allocation22], 0 }
  0x14   :  { %38 = vsyncpa [#allocation25], 0  ;;  %s3715_s29 = smov 0  }
  0x15 LB: > { %4227 = sst [smem:[#allocation34_spill]] %s3550_s29  ;;  %s3552_s2 = smov [#allocation6]   ;;  %s3550_s29 = sphi %s3715_s29, %s44_s29  }
  0x16   : > { %s637_s6 = sshll.u32 %s3552_s2, 4  ;;  %s3721_s30 = sadd.s32 4294967295, %s3550_s29   ;;  %s638_s6 = int_to_ptr.vmem [resolvable:$true] %s637_s6 }
  0x17   : > { %p2631_p0 = scmp.ge.s32.totalorder %s3550_s29, 1  ;;  %p610_p1 = scmp.lt.s32.totalorder %s3550_s29, 5 }
  0x18   : > { %p4214_p2 = scmp.eq.s32.totalorder %s3721_s30, 0  ;;  %s3553_s3 = smov [#allocation9]  }
  0x19   : > { %p3726_p3 = pnand %p2631_p0, %p610_p1  ;;  %s658_s26 = sshll.u32 %s3553_s3, 4  ;;  %s3732_s26 = int_to_ptr.vmem [resolvable:$true] %s658_s26 }
  0x1a   : > { %s3554_s8 = smov [#allocation12]   ;;  %s3555_s4 = smov [#allocation15]  }
  0x1b   : > { %p2964_p4 = pneg %p3726_p3  ;;  %s683_s27 = sshll.u32 %s3554_s8, 4  ;;  %s3740_s27 = int_to_ptr.vmem [resolvable:$true] %s683_s27 }
  0x1c   : > { %s3742_s28 = sshll.u32 %s3555_s4, 4  ;;  %s3159_s5 = scalar_lea.vmem %s638_s6, 16  ;;  %s712_s28 = int_to_ptr.vmem [resolvable:$true] %s3742_s28 }
  0x1d   : > { %p3736_p5 = pnand %p4214_p2, %p2964_p4  ;;  %p3160_p7 = scmp.ne.s32.totalorder %s638_s6, %s3159_s5 }
  0x1e   : > { %s3166_s0 = scalar_lea.vmem %s638_s6, 32  ;;  %p3167_p10 = scmp.lt.s32.totalorder %s638_s6, %s638_s6 }
  0x1f   : > { %p3746_p6 = pneg %p3736_p5  ;;  %p3168_p11 = scmp.lt.s32.totalorder %s3166_s0, %s3159_s5 }
  0x21   : > { %p3162_p8 = pnand %p3160_p7, %p3746_p6  ;;  %p3169_p12 = por %p3168_p11, %p3167_p10 }
  0x23   : > { %p3163_p9 = pneg %p3162_p8 }
  0x25   : > { %p3170_p13 = pnand %p3169_p12, %p3163_p9 }
  0x27   : > { %3173 = shalt.err (!%p3170_p13)
}
  0x28   : > { %s4231_s8 = sld [smem:[#allocation38_spill]]  ;;  %s3185_s4 = scalar_lea.vmem %s3732_s26, 256 }
  0x29   : > { %p3186_p0 = scmp.ne.s32.totalorder %s3732_s26, %s3185_s4  ;;  %p3193_p7 = scmp.lt.s32.totalorder %s3732_s26, %s3732_s26 }
  0x2a   : > { %p3194_p8 = scmp.lt.s32.totalorder %s3185_s4, %s3185_s4 }
  0x2b   : > { %p3188_p1 = pnand %p3186_p0, %p3746_p6 }
  0x2c   : > { %p3195_p9 = por %p3194_p8, %p3193_p7 }
  0x2d   : > { %p3189_p4 = pneg %p3188_p1 }
  0x2e   : > { %2970 = dma.hbm_to_vmem [thread:$0]  (!%p3736_p5), %s4231_s8, 16, %s638_s6, [#allocation7]  }
  0x2f   : > { %p3196_p10 = pnand %p3195_p9, %p3189_p4 }
  0x31   : > { %3199 = shalt.err (!%p3196_p10)
}
  0x32   : > { %s3556_s5 = smov 128   ;;  %s3557_s6 = smov 8  }
  0x33   : > { %s4232_s3 = sld [smem:[#allocation40_spill]]  ;;  %s3211_s8 = scalar_lea.vmem %s3740_s27, 16 }
  0x34   : > { %p3212_p11 = scmp.ne.s32.totalorder %s3740_s27, %s3211_s8  ;;  %s3218_s4 = scalar_lea.vmem %s3740_s27, 32 }
  0x35   : > { %p3219_p0 = scmp.lt.s32.totalorder %s3740_s27, %s3740_s27  ;;  %p3220_p1 = scmp.lt.s32.totalorder %s3218_s4, %s3211_s8 }
  0x36   : > { %p3214_p12 = pnand %p3212_p11, %p3746_p6 }
  0x37   : > { %p3221_p4 = por %p3220_p1, %p3219_p0 }
  0x38   : > { %p3215_p13 = pneg %p3214_p12 }
  0x39   : > { %2976 = dma.hbm_to_vmem [thread:$0]  (!%p3736_p5), %s4232_s3, 256, %s3732_s26, [#allocation10], %s3556_s5, %s3556_s5, %s3557_s6  }
  0x3a   : > { %p3222_p7 = pnand %p3221_p4, %p3215_p13 }
  0x3c   : > { %3225 = shalt.err (!%p3222_p7)
}
  0x3d   : > { %s4233_s23 = sld [smem:[#allocation42_spill]]  ;;  %s3237_s26 = scalar_lea.vmem %s712_s28, 16 }
  0x3e   : > { %p3238_p8 = scmp.ne.s32.totalorder %s712_s28, %s3237_s26  ;;  %s3244_s5 = scalar_lea.vmem %s712_s28, 32 }
  0x3f   : > { %p3245_p11 = scmp.lt.s32.totalorder %s712_s28, %s712_s28  ;;  %p3246_p12 = scmp.lt.s32.totalorder %s3244_s5, %s3237_s26 }
  0x40   : > { %p3240_p9 = pnand %p3238_p8, %p3746_p6 }
  0x41   : > { %p3247_p13 = por %p3246_p12, %p3245_p11 }
  0x42   : > { %p3241_p10 = pneg %p3240_p9 }
  0x43   : > { %2982 = dma.hbm_to_vmem [thread:$0]  (!%p3736_p5), %s4233_s23, 16, %s3740_s27, [#allocation13]  }
  0x44   : > { %p3248_p0 = pnand %p3247_p13, %p3241_p10 }
  0x46   : > { %3251 = shalt.err (!%p3248_p0)
}
  0x47   : > { %2988 = dma.hbm_to_vmem [thread:$0]  (!%p3736_p5), %s4196_s11, 16, %s712_s28, [#allocation16]  }
  0x48   : > { %s3558_s23 = smov [#allocation18]   ;;  %s3559_s29 = smov [#allocation21]  }
  0x49   : > { %s733_s25 = sshll.u32 %s3558_s23, 4  ;;  %s761_s27 = sshll.u32 %s3559_s29, 4  ;;  %s734_s25 = int_to_ptr.vmem [resolvable:$true] %s733_s25  ;;  %s762_s27 = int_to_ptr.vmem [resolvable:$true] %s761_s27 }
  0x4a   : > { %s3263_s2 = scalar_lea.vmem %s734_s25, 16  ;;  %s3270_s3 = scalar_lea.vmem %s734_s25, 32 }
  0x4b   : > { %p3264_p1 = scmp.ne.s32.totalorder %s734_s25, %s3263_s2  ;;  %p3271_p8 = scmp.lt.s32.totalorder %s734_s25, %s734_s25 }
  0x4c   : > { %p3272_p9 = scmp.lt.s32.totalorder %s3270_s3, %s3263_s2 }
  0x4d   : > { %p3266_p4 = pnand %p3264_p1, %p3746_p6 }
  0x4e   : > { %p3273_p10 = por %p3272_p9, %p3271_p8 }
  0x4f   : > { %p3267_p7 = pneg %p3266_p4 }
  0x51   : > { %p3274_p11 = pnand %p3273_p10, %p3267_p7 }
  0x53   : > { %3277 = shalt.err (!%p3274_p11)
}
  0x54   : > { %2994 = dma.hbm_to_vmem [thread:$0]  (!%p3736_p5), %s4198_s13, 16, %s734_s25, [#allocation19]  }
  0x55   : > { %s3289_s4 = scalar_lea.vmem %s762_s27, 16  ;;  %s3296_s26 = scalar_lea.vmem %s762_s27, 32 }
  0x56   : > { %p3290_p12 = scmp.ne.s32.totalorder %s762_s27, %s3289_s4  ;;  %p3297_p1 = scmp.lt.s32.totalorder %s762_s27, %s762_s27 }
  0x57   : > { %p3298_p4 = scmp.lt.s32.totalorder %s3296_s26, %s3289_s4 }
  0x58   : > { %p3292_p13 = pnand %p3290_p12, %p3746_p6 }
  0x59   : > { %p3299_p2 = por %p3298_p4, %p3297_p1 }
  0x5a   : > { %p3293_p0 = pneg %p3292_p13 }
  0x5c   : > { %p3300_p8 = pnand %p3299_p2, %p3293_p0 }
  0x5e   : > { %3303 = shalt.err (!%p3300_p8)
}
  0x5f   : > { %3000 = dma.hbm_to_vmem [thread:$0]  (!%p3736_p5), %s4202_s17, 16, %s762_s27, [#allocation22]  }
  0x60   : > { %s3560_s0 = smov [#allocation4]   ;;  %s3561_s25 = smov [#allocation8]  }
  0x61   : > { %s626_s23 = sshll.u32 %s3560_s0, 4  ;;  %s648_s29 = sshll.u32 %s3561_s25, 4  ;;  %s627_s23 = int_to_ptr.vmem [resolvable:$true] %s626_s23  ;;  %s649_s29 = int_to_ptr.vmem [resolvable:$true] %s648_s29 }
  0x62   : > { %s3315_s2 = scalar_lea.vmem %s627_s23, 16  ;;  %s3322_s3 = scalar_lea.vmem %s627_s23, 32 }
  0x63   : > { %p3316_p7 = scmp.ne.s32.totalorder %s627_s23, %s3315_s2  ;;  %p3323_p2 = scmp.lt.s32.totalorder %s627_s23, %s627_s23 }
  0x64   : > { %p3324_p11 = scmp.lt.s32.totalorder %s3322_s3, %s3315_s2 }
  0x65   : > { %p3318_p9 = pnand %p3316_p7, %p3746_p6 }
  0x66   : > { %p3325_p12 = por %p3324_p11, %p3323_p2 }
  0x67   : > { %p3319_p10 = pneg %p3318_p9 }
  0x69   : > { %p3326_p13 = pnand %p3325_p12, %p3319_p10 }
  0x6b   : > { %3329 = shalt.err (!%p3326_p13)
}
  0x6c   : > { %s4234_s28 = sld [smem:[#allocation37_spill]]  ;;  %s3341_s4 = scalar_lea.vmem %s649_s29, 16 }
  0x6d   : > { %p3342_p0 = scmp.ne.s32.totalorder %s649_s29, %s3341_s4  ;;  %s3348_s26 = scalar_lea.vmem %s649_s29, 32 }
  0x6e   : > { %p3349_p8 = scmp.lt.s32.totalorder %s649_s29, %s649_s29  ;;  %p3350_p7 = scmp.lt.s32.totalorder %s3348_s26, %s3341_s4 }
  0x6f   : > { %p3344_p1 = pnand %p3342_p0, %p3746_p6 }
  0x70   : > { %p3351_p9 = por %p3350_p7, %p3349_p8 }
  0x71   : > { %p3345_p4 = pneg %p3344_p1 }
  0x72   : > { %2967 = dma.hbm_to_vmem [thread:$0]  (!%p3736_p5), %s4234_s28, 16, %s627_s23, [#allocation5]  }
  0x73   : > { %p3352_p2 = pnand %p3351_p9, %p3345_p4 }
  0x75   : > { %3355 = shalt.err (!%p3352_p2)
}
  0x76   : > { %s4235_s0 = sld [smem:[#allocation39_spill]]  ;;  %s3562_s23 = smov [#allocation11]  }
  0x77   : > { %s672_s25 = sshll.u32 %s3562_s23, 4  ;;  %s3563_s2 = smov [#allocation14]   ;;  %s673_s25 = int_to_ptr.vmem [resolvable:$true] %s672_s25 }
  0x78   : > { %s697_s3 = sshll.u32 %s3563_s2, 4  ;;  %s3367_s8 = scalar_lea.vmem %s673_s25, 16  ;;  %s698_s3 = int_to_ptr.vmem [resolvable:$true] %s697_s3 }
  0x79   : > { %p3368_p10 = scmp.ne.s32.totalorder %s673_s25, %s3367_s8  ;;  %s3374_s27 = scalar_lea.vmem %s673_s25, 32 }
  0x7a   : > { %p3375_p13 = scmp.lt.s32.totalorder %s673_s25, %s673_s25  ;;  %p3376_p0 = scmp.lt.s32.totalorder %s3374_s27, %s3367_s8 }
  0x7b   : > { %p3370_p11 = pnand %p3368_p10, %p3746_p6 }
  0x7c   : > { %2973 = dma.hbm_to_vmem [thread:$0]  (!%p3736_p5), %s4235_s0, 16, %s649_s29, [#allocation7]  }
  0x7d   : > { %p3371_p12 = pneg %p3370_p11  ;;  %p3377_p1 = por %p3376_p0, %p3375_p13 }
  0x7f   : > { %p3378_p4 = pnand %p3377_p1, %p3371_p12 }
  0x81   : > { %3381 = shalt.err (!%p3378_p4)
}
  0x82   : > { %s4236_s4 = sld [smem:[#allocation41_spill]]  ;;  %s3393_s26 = scalar_lea.vmem %s698_s3, 16 }
  0x83   : > { %p3394_p8 = scmp.ne.s32.totalorder %s698_s3, %s3393_s26  ;;  %s3400_s5 = scalar_lea.vmem %s698_s3, 32 }
  0x84   : > { %p3401_p2 = scmp.lt.s32.totalorder %s698_s3, %s698_s3  ;;  %p3402_p10 = scmp.lt.s32.totalorder %s3400_s5, %s3393_s26 }
  0x85   : > { %p3396_p7 = pnand %p3394_p8, %p3746_p6 }
  0x86   : > { %p3403_p11 = por %p3402_p10, %p3401_p2 }
  0x87   : > { %p3397_p9 = pneg %p3396_p7 }
  0x88   : > { %2979 = dma.hbm_to_vmem [thread:$0]  (!%p3736_p5), %s4236_s4, 16, %s673_s25, [#allocation10]  }
  0x89   : > { %p3404_p13 = pnand %p3403_p11, %p3397_p9 }
  0x8b   : > { %3407 = shalt.err (!%p3404_p13)
}
  0x8c   : > { %s4237_s23 = sld [smem:[#allocation44_spill]]  ;;  %s3564_s25 = smov [#allocation17]  }
  0x8d   : > { %s722_s2 = sshll.u32 %s3564_s25, 4  ;;  %s3565_s8 = smov [#allocation20]   ;;  %s723_s2 = int_to_ptr.vmem [resolvable:$true] %s722_s2 }
  0x8e   : > { %s747_s27 = sshll.u32 %s3565_s8, 4  ;;  %s3419_s28 = scalar_lea.vmem %s723_s2, 16  ;;  %s748_s27 = int_to_ptr.vmem [resolvable:$true] %s747_s27 }
  0x8f   : > { %p3420_p12 = scmp.ne.s32.totalorder %s723_s2, %s3419_s28  ;;  %s3426_s29 = scalar_lea.vmem %s723_s2, 32 }
  0x90   : > { %p3427_p4 = scmp.lt.s32.totalorder %s723_s2, %s723_s2  ;;  %p3428_p8 = scmp.lt.s32.totalorder %s3426_s29, %s3419_s28 }
  0x91   : > { %p3422_p0 = pnand %p3420_p12, %p3746_p6 }
  0x92   : > { %2985 = dma.hbm_to_vmem [thread:$0]  (!%p3736_p5), %s4237_s23, 16, %s698_s3, [#allocation13]  }
  0x93   : > { %p3423_p1 = pneg %p3422_p0  ;;  %p3429_p7 = por %p3428_p8, %p3427_p4 }
  0x95   : > { %p3430_p9 = pnand %p3429_p7, %p3423_p1 }
  0x97   : > { %3433 = shalt.err (!%p3430_p9)
}
  0x98   : > { %2991 = dma.hbm_to_vmem [thread:$0]  (!%p3736_p5), %s4197_s12, 16, %s723_s2, [#allocation16]  }
  0x99   : > { %s3445_s26 = scalar_lea.vmem %s748_s27, 16  ;;  %s3452_s5 = scalar_lea.vmem %s748_s27, 32 }
  0x9a   : > { %p3446_p2 = scmp.ne.s32.totalorder %s748_s27, %s3445_s26  ;;  %p3453_p13 = scmp.lt.s32.totalorder %s748_s27, %s748_s27 }
  0x9b   : > { %p3454_p12 = scmp.lt.s32.totalorder %s3452_s5, %s3445_s26 }
  0x9c   : > { %p3448_p10 = pnand %p3446_p2, %p3746_p6 }
  0x9d   : > { %p3455_p0 = por %p3454_p12, %p3453_p13 }
  0x9e   : > { %p3449_p11 = pneg %p3448_p10 }
  0xa0   : > { %p3456_p4 = pnand %p3455_p0, %p3449_p11 }
  0xa2   : > { %3459 = shalt.err (!%p3456_p4)
}
  0xa3   : > { %2997 = dma.hbm_to_vmem [thread:$0]  (!%p3736_p5), %s4200_s15, 16, %s748_s27, [#allocation19]  }
  0xa4   : > { %s3566_s23 = smov [#allocation23]   ;;  %s3567_s2 = smov [#allocation24]  }
  0xa5   : > { %s772_s25 = sshll.u32 %s3566_s23, 4  ;;  %s783_s8 = sshll.u32 %s3567_s2, 4  ;;  %s773_s25 = int_to_ptr.vmem [resolvable:$true] %s772_s25  ;;  %s784_s8 = int_to_ptr.vmem [resolvable:$true] %s783_s8 }
  0xa6   : > { %s3471_s28 = scalar_lea.vmem %s773_s25, 16  ;;  %s3478_s29 = scalar_lea.vmem %s773_s25, 32 }
  0xa7   : > { %p3472_p1 = scmp.ne.s32.totalorder %s773_s25, %s3471_s28  ;;  %p3479_p9 = scmp.lt.s32.totalorder %s773_s25, %s773_s25 }
  0xa8   : > { %p3480_p2 = scmp.lt.s32.totalorder %s3478_s29, %s3471_s28 }
  0xa9   : > { %p3474_p8 = pnand %p3472_p1, %p3746_p6 }
  0xaa   : > { %p3481_p10 = por %p3480_p2, %p3479_p9 }
  0xab   : > { %p3475_p7 = pneg %p3474_p8 }
  0xad   : > { %p3482_p11 = pnand %p3481_p10, %p3475_p7 }
  0xaf   : > { %3485 = shalt.err (!%p3482_p11)
}
  0xb0   : > { %3003 = dma.hbm_to_vmem [thread:$0]  (!%p3736_p5), %s4203_s18, 16, %s773_s25, [#allocation22]  }
  0xb1   : > { %s3497_s3 = scalar_lea.vmem %s784_s8, 16  ;;  %s3504_s26 = scalar_lea.vmem %s784_s8, 32 }
  0xb2   : > { %p3498_p13 = scmp.ne.s32.totalorder %s784_s8, %s3497_s3  ;;  %p3505_p4 = scmp.lt.s32.totalorder %s784_s8, %s784_s8 }
  0xb3   : > { %p3506_p1 = scmp.lt.s32.totalorder %s3504_s26, %s3497_s3 }
  0xb4   : > { %p3500_p12 = pnand %p3498_p13, %p3746_p6 }
  0xb5   : > { %p3507_p8 = por %p3506_p1, %p3505_p4 }
  0xb6   : > { %p3501_p0 = pneg %p3500_p12 }
  0xb8   : > { %p3508_p9 = pnand %p3507_p8, %p3501_p0 }
  0xba   : > { %3511 = shalt.err (!%p3508_p9)
}
  0xbb   : > { %3006 = dma.hbm_to_vmem [thread:$0]  (!%p3736_p5), %s4204_s19, 16, %s784_s8, [#allocation25]  }
  0xbc   : > { %816 = sbr.rel (%p3726_p3) target bundleno = 5011 (0x1393), region = 116  ;;  %p4238_p7 = scmp.eq.s32.totalorder (!%p3726_p3), %s3721_s30, 0 }
  0xc1   : > { %3517 = dma.done.wait (%p4238_p7), [#allocation5], 16   ;;  %p4239_p6 = pmov %p4238_p7 }
  0xc3   : > { %3519 = vsyncadd (%p4239_p6), [#allocation5], 4294967280  ;;  %p4240_p2 = pmov %p4239_p6 }
  0xc5   : > { %3521 = dma.done.wait (%p4240_p2), [#allocation7], 32   ;;  %p4241_p10 = pmov %p4240_p2 }
  0xc6   : > { %p4242_p11 = pmov %p4240_p2 }
  0xc7   : > { %3523 = vsyncadd (%p4241_p10), [#allocation7], 4294967264 }
  0xc8   : > { %3525 = dma.done.wait (%p4242_p11), [#allocation10], 272   ;;  %p4243_p5 = pmov %p4240_p2 }
  0xc9   : > { %p4244_p3 = pmov %p4240_p2 }
  0xca   : > { %3527 = vsyncadd (%p4243_p5), [#allocation10], 4294967024 }
  0xcb   : > { %3529 = dma.done.wait (%p4244_p3), [#allocation13], 32   ;;  %p4245_p13 = pmov %p4240_p2 }
  0xcc   : > { %p4246_p12 = pmov %p4240_p2 }
  0xcd   : > { %3531 = vsyncadd (%p4245_p13), [#allocation13], 4294967264 }
  0xce   : > { %3533 = dma.done.wait (%p4246_p12), [#allocation16], 32   ;;  %p4247_p0 = pmov %p4240_p2 }
  0xd0   : > { %3535 = vsyncadd (%p4247_p0), [#allocation16], 4294967264  ;;  %p4248_p4 = pmov %p4247_p0 }
  0xd1   : > { %p4249_p1 = pmov %p4247_p0 }
  0xd2   : > { %3537 = dma.done.wait (%p4248_p4), [#allocation19], 32  }
  0xd3   : > { %3539 = vsyncadd (%p4249_p1), [#allocation19], 4294967264  ;;  %p4250_p8 = pmov %p4247_p0 }
  0xd4   : > { %p4251_p9 = pmov %p4247_p0 }
  0xd5   : > { %3541 = dma.done.wait (%p4250_p8), [#allocation22], 32  }
  0xd6   : > { %3543 = vsyncadd (%p4251_p9), [#allocation22], 4294967264  ;;  %p4252_p7 = pmov %p4247_p0 }
  0xd7   : > { %p4253_p6 = pmov %p4247_p0 }
  0xd8   : > { %3545 = dma.done.wait (%p4252_p7), [#allocation25], 16  }
  0xd9   : > { %3547 = vsyncadd (%p4253_p6), [#allocation25], 4294967280  ;;  %p941_p2 = scmp.lt.s32.totalorder %s3721_s30, 3  ;;  %v3568_v0 = vmov 0.0   ;;  %vm3569_vm0 = vmmov 0   ;;  %s4254_s9 = sld [smem:[#allocation36_spill]] }
  0xda   : > { %2773 = vmatprep.subr.bf16.mxu0 %v3568_v0  ;;  %2779 = vmatprep.mubr.msk.bf16.mxu0 %vm3569_vm0, %v3568_v0  ;;  %s4255_s7 = sld [smem:[#allocation35_spill]]  ;;  %vm976_vm1 = vcmask 392192   ;;  %v1021_v13 = vld [vmem:[#allocation6] sm:$0x1]  ;;  %v1022_v14 = vld [vmem:[#allocation8] sm:$0x1] }
  0xdb   : > { %s4261_s30 = smov (!%p941_p2, %s3721_s30), 3  ;;  %v1023_v15 = vadd.f32 %v1022_v14, %v1021_v13  ;;  %vm1024_vm2 = vcmask 253952   ;;  %v2666_v16 = vld [vmem:[#allocation4] ss:$0 sm:$0xff]  ;;  %v1026_v18 = vld [vmem:[#allocation9] sm:$0xff]  ;;  %vm1030_vm3 = vcmask 261120  }
  0xdc   : > { %s2710_s29 = sshll.u32 %s4261_s30, 4  ;;  %v1027_v23 = vld [vmem:[#allocation9 + $0x8] sm:$0xff]  ;;  %s4256_s25 = sld [smem:[#allocation43_spill]]  ;;  %vm1173_vm4 = vcmask 64512   ;;  %vm1237_vm5 = vcmask 138240   ;;  %vm1244_vm6 = vcmask 131072  }
  0xdd   : > { %1025 = vst.msk [vmem:[#allocation2] sm:$0x1] %vm1024_vm2, %v1023_v15  ;;  %v2670_v15 = vld [vmem:[#allocation14] ss:$0 sm:$0xff]  ;;  %s3570_s3 = smov 96   ;;  %s3571_s26 = smov 64  }
  0xde   : > { %s3572_s5 = smov 120   ;;  %s3573_s6 = smov 88   ;;  %vm1285_vm7 = vcmask 1040384   ;;  %vm1341_vm8 = vcmask 57344   ;;  %vm1523_vm9 = vcmask 130112   ;;  %vm1526_vm10 = vcmask 122944  }
  0xdf   : > { %v964_v1 = vld [vmem:[%s4254_s9 + $0x20] sm:$0xff]  ;;  %v965_v2 = vld [vmem:[%s4254_s9 + $0x28] sm:$0xff]  ;;  %v962_v3 = vld [vmem:[%s4254_s9 + $0x10] sm:$0xff]  ;;  %s3577_s0 = smov 112   ;;  %s3578_s23 = smov 48   ;;  %vm1708_vm11 = vcmask 195712  }
  0xe0   : > { %v968_v4 = vpack.c.bf16 %v965_v2, %v964_v1  ;;  %v963_v5 = vld [vmem:[%s4254_s9 + $0x18] sm:$0xff]  ;;  %v960_v7 = vld [vmem:[%s4254_s9] sm:$0xff]  ;;  %v961_v8 = vld [vmem:[%s4254_s9 + $0x8] sm:$0xff]  ;;  %s945_s1 = scalar_lea.vmem %s4255_s7, %s2710_s29  ;;  %s3575_s7 = smov 56   ;;  %vm1711_vm12 = vcmask 188544   ;;  %vm1893_vm13 = vcmask 261312  }
  0xe1   : > { %v967_v6 = vpack.c.bf16 %v963_v5, %v962_v3  ;;  %v966_v9 = vpack.c.bf16 %v961_v8, %v960_v7  ;;  %v957_v10 = vld [vmem:[%s945_s1] sm:$0xff]  ;;  %v958_v11 = vld [vmem:[%s945_s1 + $0x8] sm:$0xff]  ;;  %s3576_s1 = smov 80   ;;  %s3579_s2 = smov 72   ;;  %vm1896_vm14 = vcmask 254144   ;;  %vm2149_vm15 = vcmask 523264  }
  0xe2   : > { %2774 = vmatpush3.bf16.msra.mxu0 %v968_v4  ;;  %v959_v12 = vpack.c.bf16 %v958_v11, %v957_v10  ;;  %v1100_v48 = vld [vmem:[%s4256_s25 + $0x10] sm:$0xff]  ;;  %v1101_v49 = vld [vmem:[%s4256_s25 + $0x18] sm:$0xff]  ;;  %v1098_v50 = vld [vmem:[%s4256_s25] sm:$0xff]  ;;  %s3580_s8 = smov 104   ;;  %s3581_s28 = smov 40   ;;  %vm2338_vm0 = vcmask 122880  }
  0xe3   : > { %2775 = vmatprep.subr.bf16.mxu0 %v3568_v0  ;;  %v1103_v51 = vpack.c.bf16 %v1101_v49, %v1100_v48  ;;  %v1099_v52 = vld [vmem:[%s4256_s25 + $0x8] sm:$0xff]  ;;  %v2668_v1 = vld [vmem:[#allocation11] ss:$0 sm:$0xff]  ;;  %s3582_s29 = smov 8   ;;  %s3583_s4 = smov 16  }
  0xe4   : > { %v1102_v53 = vpack.c.bf16 %v1099_v52, %v1098_v50  ;;  %v2669_v7 = vld [vmem:[#allocation12] ss:$0 sm:$0xff]  ;;  %s4257_s27 = sld [smem:[#allocation45_spill]] }
  0xe5   : > { %2783 = vmatprep.subr.bf16.mxu1 %v1103_v51 }
  0xe6   : > { %2776 = vmatpush3.bf16.msra.mxu0 %v967_v6  ;;  %2784 = vmatpush3.bf16.msra.mxu1 %v1103_v51 }
  0xe7   : > { %2777 = vmatprep.subr.bf16.mxu0 %v3568_v0  ;;  %2785 = vmatprep.subr.bf16.mxu1 %v1102_v53 }
  0xea   : > { %2778 = vmatpush3.bf16.msra.mxu0 %v966_v9  ;;  %2786 = vmatpush3.bf16.msra.mxu1 %v1102_v53 }
  0xed   : > { %2780 = vmatmul.mubr.msk.bf16.vlgmr.msra.gmra.mxu0 %vm976_vm1, %v959_v12 }
 0x1ad   : > { %v1014_v17 = vpop.f32.mrf.mxu0 }
 0x1ae   : > { %v1015_v19 = vadd.f32 %v2666_v16, %v1014_v17 }
 0x1af   : > { %v2781_v20 = vpop.f32.mrf.mxu0 }
 0x1b0   : > { %v1028_v21 = vadd.f32 %v1026_v18, %v1015_v19 }
 0x1b1   : > { %v1017_v22 = vpop.f32.mrf.mxu0 }
 0x1b2   : > { %1031 = vst.msk [vmem:[#allocation2 + $0x1] sm:$0xff] %vm1030_vm3, %v1028_v21  ;;  %v1018_v24 = vadd.f32 %v2666_v16, %v1017_v22 }
 0x1b3   : > { %v2782_v25 = vpop.f32.mrf.mxu0 }
 0x1b4   : > { %v1029_v26 = vadd.f32 %v1027_v23, %v1018_v24 }
 0x1b6   : > { %1032 = vst.msk [vmem:[#allocation2 + $0x9] sm:$0xff] %vm1030_vm3, %v1029_v26 }
 0x1b9   : > { %v3924_v27 = vld [vmem:[#allocation2] sm:$0xff] }
 0x1ba   : > { %v1036_v28 = vsel %vm1030_vm3, %v3924_v27, 0.0 }
 0x1bb   : > { %1037 = vadd.xlane.f32.xlu0 %v1036_v28 }
 0x1bd   : > { %v3928_v29 = vld [vmem:[#allocation2 + $0x10] sm:$0x1]  ;;  %v3930_v30 = vld [vmem:[#allocation2 + $0x8] sm:$0xff] }
 0x1be   : > { %v1042_v31 = vsel %vm1024_vm2, %v3928_v29, 0.0  ;;  %v1039_v32 = vsel %vm1030_vm3, %v3930_v30, 0.0 }
 0x1bf   : > { %1043 = vadd.xlane.f32.xlu1 %v1042_v31  ;;  %1040 = vadd.xlane.f32.xlu0 %v1039_v32 }
 0x244   : > { %v1038_v33 = vpop.xlane.xlu0 %1037 }
 0x245   : > { %v1046_v34 = vmul.f32 0.03125, %v1038_v33 }
 0x247   : > { %v1049_v35 = vsub.f32 %v3924_v27, %v1046_v34 }
 0x248   : > { %v1044_v36 = vpop.xlane.xlu1 %1043  ;;  %v1041_v37 = vpop.xlane.xlu0 %1040 }
 0x249   : > { %v1048_v38 = vmul.f32 0.03125, %v1044_v36  ;;  %v1047_v39 = vmul.f32 0.03125, %v1041_v37  ;;  %v1052_v40 = vmul.f32 %v1049_v35, %v1049_v35 }
 0x24b   : > { %v1051_v41 = vsub.f32 %v3928_v29, %v1048_v38  ;;  %v1050_v42 = vsub.f32 %v3930_v30, %v1047_v39  ;;  %v1055_v43 = vsel %vm1030_vm3, %v1052_v40, 0.0 }
 0x24c   : > { %1056 = vadd.xlane.f32.xlu1 %v1055_v43 }
 0x24d   : > { %v1054_v44 = vmul.f32 %v1051_v41, %v1051_v41  ;;  %v1053_v45 = vmul.f32 %v1050_v42, %v1050_v42 }
 0x24f   : > { %v1061_v46 = vsel %vm1024_vm2, %v1054_v44, 0.0  ;;  %v1058_v47 = vsel %vm1030_vm3, %v1053_v45, 0.0 }
 0x250   : > { %1062 = vadd.xlane.f32.xlu1 %v1061_v46  ;;  %1059 = vadd.xlane.f32.xlu0 %v1058_v47 }
 0x2d5   : > { %v1057_v54 = vpop.xlane.xlu1 %1056 }
 0x2d6   : > { %v1064_v55 = vmul.f32 0.03125, %v1057_v54 }
 0x2d8   : > { %v1067_v56 = vadd.f32 1e-06, %v1064_v55 }
 0x2d9   : > { %v1063_v57 = vpop.xlane.xlu1 %1062  ;;  %v1060_v58 = vpop.xlane.xlu0 %1059 }
 0x2da   : > { %3076 = vrsqrt.f32 %v1067_v56  ;;  %v1066_v59 = vmul.f32 0.03125, %v1063_v57  ;;  %v1065_v60 = vmul.f32 0.03125, %v1060_v58  ;;  %v3574_v58 = vmov 0  }
 0x2dc   : > { %v1069_v61 = vadd.f32 1e-06, %v1066_v59  ;;  %v1068_v62 = vadd.f32 1e-06, %v1065_v60  ;;  %v3982_v59 = vsel %vm1285_vm7, 65535, %v3574_v58 }
 0x2de   : > { %3078 = vrsqrt.f32 %v1069_v61 }
 0x2df   : > { %3080 = vrsqrt.f32 %v1068_v62 }
 0x2e7   : > { %v3077_v63 = vpop.eup %3076 }
 0x2e8   : > { %v1073_v0 = vmul.f32 %v3077_v63, %v1049_v35 }
 0x2ea   : > { %v1083_v6 = vmul.f32 %v2668_v1, %v1073_v0 }
 0x2eb   : > { %v3079_v2 = vpop.eup %3078 }
 0x2ec   : > { %v3081_v3 = vpop.eup %3080  ;;  %v1075_v4 = vmul.f32 %v3079_v2, %v1051_v41  ;;  %v1093_v11 = vadd.f32 %v2669_v7, %v1083_v6 }
 0x2ed   : > { %v1074_v5 = vmul.f32 %v3081_v3, %v1050_v42 }
 0x2ee   : > { %v1085_v8 = vmul.f32 %v2668_v1, %v1075_v4 }
 0x2ef   : > { %v1084_v9 = vmul.f32 %v2668_v1, %v1074_v5 }
 0x2f0   : > { %v1095_v10 = vadd.f32 %v2669_v7, %v1085_v8 }
 0x2f1   : > { %v1094_v12 = vadd.f32 %v2669_v7, %v1084_v9 }
 0x2f2   : > { %v1097_v13 = vpack.c.bf16 %v1095_v10, %v1095_v10 }
 0x2f3   : > { %v1096_v14 = vpack.c.bf16 %v1094_v12, %v1093_v11 }
 0x2f5   : > { %2787 = vmatprep.mubr.msk.bf16.mxu1 %vm1030_vm3, %v1096_v14 }
 0x2f6   : > { %2788 = vmatmul.mubr.msk.bf16.vlgmr.msra.gmra.mxu1 %vm1030_vm3, %v1097_v13 }
 0x3b6   : > { %v2789_v16 = vpop.f32.mrf.mxu1 }
 0x3b7   : > { %v1160_v17 = vadd.f32 %v2789_v16, %v2670_v15 }
 0x3b8   : > { %v1151_v18 = vpop.f32.mrf.mxu1 }
 0x3b9   : > { %v3956_v19 = vpack.c.bf16 %v1160_v17, %v1160_v17  ;;  %v1152_v22 = vadd.f32 %v2670_v15, %v1151_v18 }
 0x3ba   : > { %v2790_v20 = vpop.f32.mrf.mxu1 }
 0x3bb   : > { %1171 = vrot.lane.b32.xlu0 %v3956_v19, %s3570_s3 }
 0x3bc   : > { %v1154_v21 = vpop.f32.mrf.mxu1 }
 0x3bd   : > { %v1155_v23 = vadd.f32 %v2670_v15, %v1154_v21 }
 0x3bf   : > { %v3959_v24 = vpack.c.bf16 %v1155_v23, %v1152_v22 }
 0x3c1   : > { %1169 = vrot.lane.b32.xlu1 %v3959_v24, %s3570_s3  ;;  %2795 = vmatprep.mubr.msk.bf16.mxu1 %vm1173_vm4, %v3959_v24 }
 0x42d   : > { %v1172_v25 = vpop.permute.xlu0 %1171 }
 0x42e   : > { %v1184_v26 = vsel %vm1173_vm4, %v1172_v25, 0  ;;  %2899 = vmatprep.subr.msk.bf16.mxu1 %vm1173_vm4, %v1172_v25 }
 0x42f   : > { %2792 = vmatpush3.bf16.xpose.msra.mxu1 %v1184_v26 }
 0x433   : > { %v1170_v28 = vpop.permute.xlu1 %1169 }
 0x434   : > { %2900 = vmatprep.subr.msk.bf16.mxu1 %vm1173_vm4, %v1170_v28  ;;  %v1181_v31 = vsel %vm1173_vm4, %v1170_v28, 0 }
 0x437   : > { %2794 = vmatpush3.bf16.xpose.msra.mxu1 %v1181_v31 }
 0x43e   : > { %2796 = vmatmul.mubr.msk.bf16.vlgmr.msra.gmra.mxu1 %vm1173_vm4, %v3956_v19 }
 0x4fe   : > { %v2797_v32 = vpop.f32.mrf.mxu1 }
 0x4ff   : > { %v1236_v39 = vmul.f32 0.35355338, %v2797_v32 }
 0x500   : > { %v1220_v33 = vpop.f32.mrf.mxu1 }
 0x501   : > { %v1234_v34 = vmul.f32 0.35355338, %v1220_v33  ;;  %v1245_v41 = vsel %vm1244_vm6, %v1236_v39, -inf }
 0x502   : > { %v2798_v35 = vpop.f32.mrf.mxu1 }
 0x503   : > { %v1238_v36 = vsel %vm1237_vm5, %v1234_v34, -inf }
 0x504   : > { %1239 = vmax.xlane.f32.xlu1 %v1238_v36  ;;  %v1223_v37 = vpop.f32.mrf.mxu1 }
 0x505   : > { %v1235_v38 = vmul.f32 0.35355338, %v1223_v37 }
 0x507   : > { %v1241_v40 = vsel %vm1237_vm5, %v1235_v38, -inf }
 0x508   : > { %1242 = vmax.xlane.f32.xlu0 %v1241_v40 }
 0x50c   : > { %1246 = vmax.xlane.f32.xlu0 %v1245_v41 }
 0x58d   : > { %v1240_v42 = vpop.xlane.xlu1 %1239 }
 0x58e   : > { %v1248_v45 = vsub.f32 %v1234_v34, %v1240_v42 }
 0x590   : > { %v1251_v49 = vmul.f32 1.442695, %v1248_v45 }
 0x591   : > { %v1243_v43 = vpop.xlane.xlu0 %1242 }
 0x592   : > { %v1249_v44 = vsub.f32 %v1235_v38, %v1243_v43 }
 0x594   : > { %v1253_v46 = vmul.f32 1.442695, %v1249_v44 }
 0x595   : > { %v1247_v47 = vpop.xlane.xlu0 %1246 }
 0x596   : > { %3082 = vpow2.f32 %v1253_v46  ;;  %v1250_v48 = vsub.f32 %v1236_v39, %v1247_v47 }
 0x598   : > { %v1255_v50 = vmul.f32 1.442695, %v1250_v48 }
 0x59a   : > { %3084 = vpow2.f32 %v1255_v50 }
 0x59b   : > { %3086 = vpow2.f32 %v1251_v49 }
 0x5a3   : > { %v3083_v51 = vpop.eup %3082 }
 0x5a4   : > { %v1260_v52 = vsel %vm1237_vm5, %v3083_v51, 0.0 }
 0x5a5   : > { %1261 = vadd.xlane.f32.xlu0 %v1260_v52 }
 0x5a7   : > { %v3085_v53 = vpop.eup %3084 }
 0x5a8   : > { %v1263_v54 = vsel %vm1244_vm6, %v3085_v53, 0.0  ;;  %v3087_v55 = vpop.eup %3086 }
 0x5a9   : > { %1264 = vadd.xlane.f32.xlu1 %v1263_v54  ;;  %v1257_v56 = vsel %vm1237_vm5, %v3087_v55, 0.0 }
 0x5ad   : > { %1258 = vadd.xlane.f32.xlu1 %v1257_v56 }
 0x5bb   : > { %1276 = vrot.lane.b32.xlu0 %v3956_v19, %s3571_s26 }
 0x5be   : > { %1274 = vrot.lane.b32.xlu1 %v3959_v24, %s3571_s26 }
 0x5bf   : > { %1343 = vrot.lane.b32.xlu0 %v3959_v24, %s3572_s5 }
 0x5c2   : > { %1349 = vrot.lane.b32.xlu1 %v3956_v19, %s3573_s6 }
 0x5c6   : > { %1347 = vrot.lane.b32.xlu1 %v3959_v24, %s3573_s6 }
 0x5ca   : > { %1345 = vrot.lane.b32.xlu1 %v3956_v19, %s3572_s5  ;;  %s4258_s5 = sld [smem:[#allocation46_spill]] }
 0x62e   : > { %v1262_v57 = vpop.xlane.xlu0 %1261 }
 0x632   : > { %v1265_v60 = vpop.xlane.xlu1 %1264  ;;  %v1277_v61 = vpop.permute.xlu0 %1276 }
 0x633   : > { %v1289_v62 = vand.u32 %v3982_v59, %v1277_v61  ;;  %3088 = vrcp.f32 %v1265_v60 }
 0x634   : > { %3090 = vrcp.f32 %v1262_v57 }
 0x635   : > { %2799 = vmatprep.subr.bf16.mxu0 %v1289_v62 }
 0x636   : > { %v1259_v63 = vpop.xlane.xlu1 %1258  ;;  %2800 = vmatpush3.bf16.msra.mxu0 %v1289_v62  ;;  %v1344_v10 = vpop.permute.xlu0 %1343 }
 0x637   : > { %3092 = vrcp.f32 %v1259_v63 }
 0x63a   : > { %v1275_v0 = vpop.permute.xlu1 %1274 }
 0x63b   : > { %2801 = vmatprep.subr.bf16.mxu0 %v1275_v0 }
 0x63c   : > { %2802 = vmatpush3.bf16.msra.mxu0 %v1275_v0 }
 0x63e   : > { %v1350_v1 = vpop.permute.xlu1 %1349 }
 0x63f   : > { %2901 = vmatprep.subr.msk.bf16.mxu0 %vm1173_vm4, %v1350_v1  ;;  %v1361_v11 = vsel %vm1173_vm4, %v1350_v1, 0 }
 0x640   : > { %v3089_v2 = vpop.eup %3088 }
 0x641   : > { %v3091_v3 = vpop.eup %3090  ;;  %v1271_v5 = vmul.f32 %v3089_v2, %v3085_v53 }
 0x642   : > { %v1270_v7 = vmul.f32 %v3091_v3, %v3083_v51  ;;  %v1348_v12 = vpop.permute.xlu1 %1347 }
 0x643   : > { %v1273_v9 = vpack.c.bf16 %v1271_v5, %v1271_v5  ;;  %v1358_v13 = vsel %vm1173_vm4, %v1348_v12, 0 }
 0x644   : > { %v3093_v4 = vpop.eup %3092 }
 0x645   : > { %v1269_v6 = vmul.f32 %v3093_v4, %v3087_v55 }
 0x646   : > { %v1346_v14 = vpop.permute.xlu1 %1345 }
 0x647   : > { %v1272_v8 = vpack.c.bf16 %v1270_v7, %v1269_v6 }
 0x649   : > { %2803 = vmatprep.mubr.msk.bf16.mxu0 %vm1237_vm5, %v1272_v8 }
 0x64a   : > { %2804 = vmatmul.mubr.msk.bf16.vlgmr.msra.gmra.mxu0 %vm1237_vm5, %v1273_v9 }
 0x64b   : > { %2808 = vmatpush3.bf16.xpose.msra.mxu0 %v1361_v11  ;;  %2811 = vmatprep.mubr.msk.bf16.mxu0 %vm1173_vm4, %v1344_v10 }
 0x64c   : > { %2902 = vmatprep.subr.msk.bf16.mxu0 %vm1173_vm4, %v1348_v12 }
 0x653   : > { %2810 = vmatpush3.bf16.xpose.msra.mxu0 %v1358_v13 }
 0x65a   : > { %2812 = vmatmul.mubr.msk.bf16.vlgmr.msra.gmra.mxu0 %vm1173_vm4, %v1346_v14 }
 0x70a   : > { %v2805_v15 = vpop.f32.mrf.mxu0 }
 0x70b   : > { %1342 = vst.msk [vmem:[#allocation3 + $0x10] sm:$0x1] %vm1341_vm8, %v2805_v15 }
 0x70c   : > { %v1325_v16 = vpop.f32.mrf.mxu0 }
 0x70d   : > { %1339 = vst.msk [vmem:[#allocation3] sm:$0xff] %vm1173_vm4, %v1325_v16 }
 0x70e   : > { %v2806_v17 = vpop.f32.mrf.mxu0 }
 0x710   : > { %v1328_v18 = vpop.f32.mrf.mxu0 }
 0x711   : > { %1340 = vst.msk [vmem:[#allocation3 + $0x8] sm:$0xff] %vm1173_vm4, %v1328_v18 }
 0x71a   : > { %v2813_v20 = vpop.f32.mrf.mxu0 }
 0x71b   : > { %v1413_v25 = vmul.f32 0.35355338, %v2813_v20 }
 0x71c   : > { %v1397_v21 = vpop.f32.mrf.mxu0 }
 0x71d   : > { %v1411_v22 = vmul.f32 0.35355338, %v1397_v21  ;;  %v1420_v32 = vsel %vm1244_vm6, %v1413_v25, -inf }
 0x71e   : > { %v2814_v23 = vpop.f32.mrf.mxu0 }
 0x71f   : > { %v1414_v26 = vsel %vm1237_vm5, %v1411_v22, -inf }
 0x720   : > { %1415 = vmax.xlane.f32.xlu0 %v1414_v26  ;;  %v1400_v28 = vpop.f32.mrf.mxu0 }
 0x721   : > { %v1412_v31 = vmul.f32 0.35355338, %v1400_v28 }
 0x723   : > { %v1417_v33 = vsel %vm1237_vm5, %v1412_v31, -inf }
 0x724   : > { %1421 = vmax.xlane.f32.xlu0 %v1420_v32  ;;  %1418 = vmax.xlane.f32.xlu1 %v1417_v33 }
 0x7a9   : > { %v1416_v34 = vpop.xlane.xlu0 %1415 }
 0x7aa   : > { %v1423_v35 = vsub.f32 %v1411_v22, %v1416_v34 }
 0x7ac   : > { %v1426_v36 = vmul.f32 1.442695, %v1423_v35 }
 0x7ad   : > { %v1422_v37 = vpop.xlane.xlu0 %1421  ;;  %v1419_v38 = vpop.xlane.xlu1 %1418 }
 0x7ae   : > { %3094 = vpow2.f32 %v1426_v36  ;;  %v1425_v39 = vsub.f32 %v1413_v25, %v1422_v37  ;;  %v1424_v40 = vsub.f32 %v1412_v31, %v1419_v38 }
 0x7b0   : > { %v1430_v41 = vmul.f32 1.442695, %v1425_v39  ;;  %v1428_v42 = vmul.f32 1.442695, %v1424_v40 }
 0x7b2   : > { %3096 = vpow2.f32 %v1430_v41 }
 0x7b3   : > { %3098 = vpow2.f32 %v1428_v42 }
 0x7bb   : > { %v3095_v43 = vpop.eup %3094 }
 0x7bc   : > { %v1432_v44 = vsel %vm1237_vm5, %v3095_v43, 0.0 }
 0x7bd   : > { %1433 = vadd.xlane.f32.xlu0 %v1432_v44 }
 0x7bf   : > { %v3097_v45 = vpop.eup %3096 }
 0x7c0   : > { %v3099_v46 = vpop.eup %3098  ;;  %v1438_v47 = vsel %vm1244_vm6, %v3097_v45, 0.0 }
 0x7c1   : > { %1439 = vadd.xlane.f32.xlu1 %v1438_v47  ;;  %v1435_v48 = vsel %vm1237_vm5, %v3099_v46, 0.0 }
 0x7c2   : > { %1436 = vadd.xlane.f32.xlu0 %v1435_v48 }
 0x7d2   : > { %1449 = vrot.lane.b32.xlu1 %v3959_v24, %s3575_s7 }
 0x7d6   : > { %1534 = vrot.lane.b32.xlu1 %v3956_v19, %s3576_s1 }
 0x7d8   : > { %1451 = vrot.lane.b32.xlu0 %v3956_v19, %s3575_s7 }
 0x7da   : > { %1532 = vrot.lane.b32.xlu1 %v3959_v24, %s3576_s1 }
 0x7dc   : > { %1528 = vrot.lane.b32.xlu0 %v3959_v24, %s3577_s0 }
 0x7de   : > { %1530 = vrot.lane.b32.xlu1 %v3956_v19, %s3577_s0  ;;  %s2907_s0 = smul.u32 24, %s4261_s30 }
 0x7e0   : > { %s955_s6 = scalar_lea.vmem %s4258_s5, %s2907_s0 }
 0x846   : > { %v1434_v49 = vpop.xlane.xlu0 %1433 }
 0x847   : > { %3100 = vrcp.f32 %v1434_v49 }
 0x84a   : > { %v1440_v50 = vpop.xlane.xlu1 %1439 }
 0x84b   : > { %v1437_v51 = vpop.xlane.xlu0 %1436  ;;  %3102 = vrcp.f32 %v1440_v50 }
 0x84c   : > { %3104 = vrcp.f32 %v1437_v51 }
 0x84e   : > { %v1450_v54 = vpop.permute.xlu1 %1449 }
 0x84f   : > { %v1452_v52 = vpop.permute.xlu0 %1451 }
 0x850   : > { %v1461_v53 = vand.u32 %v1452_v52, %v3982_v59 }
 0x852   : > { %2815 = vmatprep.subr.bf16.mxu1 %v1461_v53  ;;  %v1535_v56 = vpop.permute.xlu1 %1534 }
 0x853   : > { %2816 = vmatpush3.bf16.msra.mxu1 %v1461_v53  ;;  %v1529_v1 = vpop.permute.xlu0 %1528  ;;  %v1546_v2 = vsel %vm1173_vm4, %v1535_v56, 0 }
 0x854   : > { %2817 = vmatprep.subr.bf16.mxu1 %v1450_v54  ;;  %v3101_v55 = vpop.eup %3100 }
 0x855   : > { %v1444_v61 = vmul.f32 %v3101_v55, %v3095_v43 }
 0x856   : > { %v1533_v3 = vpop.permute.xlu1 %1532 }
 0x857   : > { %2818 = vmatpush3.bf16.msra.mxu1 %v1450_v54  ;;  %v1543_v4 = vsel %vm1173_vm4, %v1533_v3, 0 }
 0x858   : > { %v3103_v57 = vpop.eup %3102  ;;  %2903 = vmatprep.subr.msk.bf16.mxu1 %vm1173_vm4, %v1535_v56 }
 0x859   : > { %v3105_v58 = vpop.eup %3104  ;;  %v1446_v60 = vmul.f32 %v3103_v57, %v3097_v45 }
 0x85a   : > { %v1445_v62 = vmul.f32 %v3105_v58, %v3099_v46  ;;  %v1531_v5 = vpop.permute.xlu1 %1530 }
 0x85b   : > { %v1448_v63 = vpack.c.bf16 %v1446_v60, %v1446_v60 }
 0x85c   : > { %v1447_v0 = vpack.c.bf16 %v1445_v62, %v1444_v61 }
 0x85e   : > { %2819 = vmatprep.mubr.msk.bf16.mxu1 %vm1237_vm5, %v1447_v0 }
 0x85f   : > { %2820 = vmatmul.mubr.msk.bf16.vlgmr.msra.gmra.mxu1 %vm1237_vm5, %v1448_v63 }
 0x860   : > { %2824 = vmatpush3.bf16.xpose.msra.mxu1 %v1546_v2  ;;  %2827 = vmatprep.mubr.msk.bf16.mxu1 %vm1173_vm4, %v1529_v1 }
 0x861   : > { %2904 = vmatprep.subr.msk.bf16.mxu1 %vm1173_vm4, %v1533_v3 }
 0x868   : > { %2826 = vmatpush3.bf16.xpose.msra.mxu1 %v1543_v4 }
 0x86f   : > { %2828 = vmatmul.mubr.msk.bf16.vlgmr.msra.gmra.mxu1 %vm1173_vm4, %v1531_v5 }
 0x91f   : > { %v4016_v6 = vpop.f32.mrf.mxu1 }
 0x921   : > { %v4018_v7 = vpop.f32.mrf.mxu1 }
 0x923   : > { %v2822_v8 = vpop.f32.mrf.mxu1 }
 0x925   : > { %v4020_v9 = vpop.f32.mrf.mxu1 }
 0x92f   : > { %v2829_v10 = vpop.f32.mrf.mxu1 }
 0x930   : > { %v1598_v14 = vmul.f32 0.35355338, %v2829_v10 }
 0x931   : > { %v1582_v11 = vpop.f32.mrf.mxu1 }
 0x932   : > { %v1596_v12 = vmul.f32 0.35355338, %v1582_v11  ;;  %v1605_v18 = vsel %vm1244_vm6, %v1598_v14, -inf }
 0x933   : > { %v2830_v13 = vpop.f32.mrf.mxu1 }
 0x934   : > { %v1599_v15 = vsel %vm1237_vm5, %v1596_v12, -inf }
 0x935   : > { %1600 = vmax.xlane.f32.xlu0 %v1599_v15  ;;  %v1585_v16 = vpop.f32.mrf.mxu1 }
 0x936   : > { %v1597_v17 = vmul.f32 0.35355338, %v1585_v16 }
 0x938   : > { %v1602_v20 = vsel %vm1237_vm5, %v1597_v17, -inf }
 0x939   : > { %1606 = vmax.xlane.f32.xlu0 %v1605_v18  ;;  %1603 = vmax.xlane.f32.xlu1 %v1602_v20 }
 0x9be   : > { %v1601_v21 = vpop.xlane.xlu0 %1600 }
 0x9bf   : > { %v1608_v22 = vsub.f32 %v1596_v12, %v1601_v21 }
 0x9c1   : > { %v1611_v23 = vmul.f32 1.442695, %v1608_v22 }
 0x9c2   : > { %v1607_v25 = vpop.xlane.xlu0 %1606  ;;  %v1604_v26 = vpop.xlane.xlu1 %1603 }
 0x9c3   : > { %3106 = vpow2.f32 %v1611_v23  ;;  %v1610_v28 = vsub.f32 %v1598_v14, %v1607_v25  ;;  %v1609_v31 = vsub.f32 %v1597_v17, %v1604_v26 }
 0x9c5   : > { %v1615_v32 = vmul.f32 1.442695, %v1610_v28  ;;  %v1613_v33 = vmul.f32 1.442695, %v1609_v31 }
 0x9c7   : > { %3108 = vpow2.f32 %v1615_v32 }
 0x9c8   : > { %3110 = vpow2.f32 %v1613_v33 }
 0x9d0   : > { %v3107_v34 = vpop.eup %3106 }
 0x9d1   : > { %v1617_v35 = vsel %vm1237_vm5, %v3107_v34, 0.0 }
 0x9d2   : > { %1618 = vadd.xlane.f32.xlu0 %v1617_v35 }
 0x9d4   : > { %v3109_v36 = vpop.eup %3108 }
 0x9d5   : > { %v3111_v37 = vpop.eup %3110  ;;  %v1623_v38 = vsel %vm1244_vm6, %v3109_v36, 0.0 }
 0x9d6   : > { %1624 = vadd.xlane.f32.xlu1 %v1623_v38  ;;  %v1620_v39 = vsel %vm1237_vm5, %v3111_v37, 0.0 }
 0x9d7   : > { %1621 = vadd.xlane.f32.xlu0 %v1620_v39 }
 0x9e7   : > { %1634 = vrot.lane.b32.xlu1 %v3959_v24, %s3578_s23 }
 0x9eb   : > { %1719 = vrot.lane.b32.xlu1 %v3956_v19, %s3579_s2 }
 0x9ed   : > { %1636 = vrot.lane.b32.xlu0 %v3956_v19, %s3578_s23  ;;  %s3584_s23 = smov 24  }
 0x9ef   : > { %1717 = vrot.lane.b32.xlu1 %v3959_v24, %s3579_s2 }
 0x9f1   : > { %1713 = vrot.lane.b32.xlu0 %v3959_v24, %s3580_s8 }
 0x9f3   : > { %1715 = vrot.lane.b32.xlu1 %v3956_v19, %s3580_s8 }
 0xa5b   : > { %v1619_v40 = vpop.xlane.xlu0 %1618 }
 0xa5c   : > { %3112 = vrcp.f32 %v1619_v40 }
 0xa5f   : > { %v1625_v41 = vpop.xlane.xlu1 %1624 }
 0xa60   : > { %v1622_v42 = vpop.xlane.xlu0 %1621  ;;  %3114 = vrcp.f32 %v1625_v41 }
 0xa61   : > { %3116 = vrcp.f32 %v1622_v42 }
 0xa63   : > { %v1635_v45 = vpop.permute.xlu1 %1634 }
 0xa64   : > { %v1637_v43 = vpop.permute.xlu0 %1636 }
 0xa65   : > { %v1646_v44 = vand.u32 %v1637_v43, %v3982_v59 }
 0xa67   : > { %2831 = vmatprep.subr.bf16.mxu0 %v1646_v44  ;;  %v1720_v47 = vpop.permute.xlu1 %1719 }
 0xa68   : > { %2832 = vmatpush3.bf16.msra.mxu0 %v1646_v44  ;;  %v1714_v55 = vpop.permute.xlu0 %1713  ;;  %v1731_v56 = vsel %vm1173_vm4, %v1720_v47, 0 }
 0xa69   : > { %2833 = vmatprep.subr.bf16.mxu0 %v1635_v45  ;;  %v3113_v46 = vpop.eup %3112 }
 0xa6a   : > { %v1629_v51 = vmul.f32 %v3113_v46, %v3107_v34 }
 0xa6b   : > { %v1718_v57 = vpop.permute.xlu1 %1717 }
 0xa6c   : > { %2834 = vmatpush3.bf16.msra.mxu0 %v1635_v45  ;;  %v1728_v58 = vsel %vm1173_vm4, %v1718_v57, 0 }
 0xa6d   : > { %v3115_v48 = vpop.eup %3114  ;;  %2905 = vmatprep.subr.msk.bf16.mxu0 %vm1173_vm4, %v1720_v47 }
 0xa6e   : > { %v3117_v49 = vpop.eup %3116  ;;  %v1631_v50 = vmul.f32 %v3115_v48, %v3109_v36  ;;  %v1905_v48 = vld [vmem:[%s4195_s10 + $0x10] sm:$0xff] }
 0xa6f   : > { %v1630_v52 = vmul.f32 %v3117_v49, %v3111_v37  ;;  %v1716_v60 = vpop.permute.xlu1 %1715  ;;  %v1906_v49 = vld [vmem:[%s4195_s10 + $0x18] sm:$0xff] }
 0xa70   : > { %v1633_v53 = vpack.c.bf16 %v1631_v50, %v1631_v50  ;;  %v1903_v50 = vld [vmem:[%s4195_s10] sm:$0xff] }
 0xa71   : > { %v1632_v54 = vpack.c.bf16 %v1630_v52, %v1629_v51  ;;  %v1908_v51 = vpack.c.bf16 %v1906_v49, %v1905_v48  ;;  %v1904_v52 = vld [vmem:[%s4195_s10 + $0x8] sm:$0xff] }
 0xa72   : > { %v2692_v48 = vld [vmem:[#allocation17] ss:$0 sm:$0xff] }
 0xa73   : > { %2835 = vmatprep.mubr.msk.bf16.mxu0 %vm1237_vm5, %v1632_v54 }
 0xa74   : > { %2836 = vmatmul.mubr.msk.bf16.vlgmr.msra.gmra.mxu0 %vm1237_vm5, %v1633_v53  ;;  %v1907_v53 = vpack.c.bf16 %v1904_v52, %v1903_v50  ;;  %v2693_v52 = vld [vmem:[#allocation18] ss:$0 sm:$0xff] }
 0xa75   : > { %2840 = vmatpush3.bf16.xpose.msra.mxu0 %v1731_v56  ;;  %2843 = vmatprep.mubr.msk.bf16.mxu0 %vm1173_vm4, %v1714_v55 }
 0xa76   : > { %2906 = vmatprep.subr.msk.bf16.mxu0 %vm1173_vm4, %v1718_v57 }
 0xa7d   : > { %2842 = vmatpush3.bf16.xpose.msra.mxu0 %v1728_v58 }
 0xa84   : > { %2844 = vmatmul.mubr.msk.bf16.vlgmr.msra.gmra.mxu0 %vm1173_vm4, %v1716_v60 }
 0xb34   : > { %v2837_v61 = vpop.f32.mrf.mxu0 }
 0xb36   : > { %v1682_v62 = vpop.f32.mrf.mxu0 }
 0xb38   : > { %v2838_v63 = vpop.f32.mrf.mxu0 }
 0xb3a   : > { %v1685_v0 = vpop.f32.mrf.mxu0 }
 0xb44   : > { %v2845_v1 = vpop.f32.mrf.mxu0 }
 0xb45   : > { %v1783_v5 = vmul.f32 0.35355338, %v2845_v1 }
 0xb46   : > { %v1767_v2 = vpop.f32.mrf.mxu0 }
 0xb47   : > { %v1781_v3 = vmul.f32 0.35355338, %v1767_v2  ;;  %v1790_v12 = vsel %vm1244_vm6, %v1783_v5, -inf }
 0xb48   : > { %v2846_v4 = vpop.f32.mrf.mxu0 }
 0xb49   : > { %v1784_v8 = vsel %vm1237_vm5, %v1781_v3, -inf  ;;  %v2689_v4 = vld [vmem:[#allocation15] ss:$0 sm:$0xff] }
 0xb4a   : > { %1785 = vmax.xlane.f32.xlu0 %v1784_v8  ;;  %v1770_v10 = vpop.f32.mrf.mxu0 }
 0xb4b   : > { %v1782_v11 = vmul.f32 0.35355338, %v1770_v10 }
 0xb4d   : > { %v1787_v13 = vsel %vm1237_vm5, %v1782_v11, -inf }
 0xb4e   : > { %1791 = vmax.xlane.f32.xlu0 %v1790_v12  ;;  %1788 = vmax.xlane.f32.xlu1 %v1787_v13 }
 0xbd3   : > { %v1786_v14 = vpop.xlane.xlu0 %1785 }
 0xbd4   : > { %v1793_v15 = vsub.f32 %v1781_v3, %v1786_v14 }
 0xbd6   : > { %v1796_v16 = vmul.f32 1.442695, %v1793_v15 }
 0xbd7   : > { %v1792_v17 = vpop.xlane.xlu0 %1791  ;;  %v1789_v18 = vpop.xlane.xlu1 %1788 }
 0xbd8   : > { %3118 = vpow2.f32 %v1796_v16  ;;  %v1795_v20 = vsub.f32 %v1783_v5, %v1792_v17  ;;  %v1794_v21 = vsub.f32 %v1782_v11, %v1789_v18 }
 0xbda   : > { %v1800_v22 = vmul.f32 1.442695, %v1795_v20  ;;  %v1798_v23 = vmul.f32 1.442695, %v1794_v21 }
 0xbdc   : > { %3120 = vpow2.f32 %v1800_v22 }
 0xbdd   : > { %3122 = vpow2.f32 %v1798_v23 }
 0xbe5   : > { %v3119_v25 = vpop.eup %3118 }
 0xbe6   : > { %v1802_v26 = vsel %vm1237_vm5, %v3119_v25, 0.0 }
 0xbe7   : > { %1803 = vadd.xlane.f32.xlu0 %v1802_v26 }
 0xbe9   : > { %v3121_v28 = vpop.eup %3120 }
 0xbea   : > { %v3123_v31 = vpop.eup %3122  ;;  %v1808_v32 = vsel %vm1244_vm6, %v3121_v28, 0.0 }
 0xbeb   : > { %1809 = vadd.xlane.f32.xlu1 %v1808_v32  ;;  %v1805_v33 = vsel %vm1237_vm5, %v3123_v31, 0.0 }
 0xbec   : > { %1806 = vadd.xlane.f32.xlu0 %v1805_v33 }
 0xbfc   : > { %1819 = vrot.lane.b32.xlu1 %v3959_v24, %s3581_s28 }
 0xc00   : > { %1514 = vrot.lane.b32.xlu1 %v4018_v7, %s3582_s29 }
 0xc02   : > { %1821 = vrot.lane.b32.xlu0 %v3956_v19, %s3581_s28 }
 0xc04   : > { %1516 = vrot.lane.b32.xlu1 %v4020_v9, %s3582_s29 }
 0xc06   : > { %1518 = vrot.lane.b32.xlu0 %v4016_v6, %s3582_s29  ;;  %s950_s29 = scalar_lea.vmem %s4209_s24, %s2907_s0 }
 0xc08   : > { %1699 = vrot.lane.b32.xlu1 %v1682_v62, %s3583_s4 }
 0xc0a   : > { %1701 = vrot.lane.b32.xlu0 %v1685_v0, %s3583_s4 }
 0xc0c   : > { %1703 = vrot.lane.b32.xlu1 %v2837_v61, %s3583_s4 }
 0xc70   : > { %v1804_v34 = vpop.xlane.xlu0 %1803 }
 0xc71   : > { %3124 = vrcp.f32 %v1804_v34 }
 0xc74   : > { %v1810_v35 = vpop.xlane.xlu1 %1809 }
 0xc75   : > { %v1807_v36 = vpop.xlane.xlu0 %1806  ;;  %3126 = vrcp.f32 %v1810_v35 }
 0xc76   : > { %3128 = vrcp.f32 %v1807_v36 }
 0xc78   : > { %v1820_v24 = vpop.permute.xlu1 %1819 }
 0xc79   : > { %v1822_v37 = vpop.permute.xlu0 %1821 }
 0xc7a   : > { %v1831_v7 = vand.u32 %v1822_v37, %v3982_v59  ;;  %v2037_v37 = vld [vmem:[%s4199_s14 + $0x18] sm:$0xff] }
 0xc7c   : > { %2847 = vmatprep.subr.bf16.mxu1 %v1831_v7  ;;  %v1515_v19 = vpop.permute.xlu1 %1514 }
 0xc7d   : > { %2848 = vmatpush3.bf16.msra.mxu1 %v1831_v7  ;;  %v1519_v6 = vpop.permute.xlu0 %1518  ;;  %1524 = vst.msk [vmem:[#allocation3] sm:$0xff] %vm1523_vm9, %v1515_v19  ;;  %v2034_v19 = vld [vmem:[%s4199_s14] sm:$0xff] }
 0xc7e   : > { %1527 = vst.msk [vmem:[#allocation3 + $0x10] sm:$0x1] %vm1526_vm10, %v1519_v6  ;;  %2849 = vmatprep.subr.bf16.mxu1 %v1820_v24  ;;  %v3125_v38 = vpop.eup %3124  ;;  %v2035_v6 = vld [vmem:[%s4199_s14 + $0x8] sm:$0xff] }
 0xc7f   : > { %v1814_v43 = vmul.f32 %v3125_v38, %v3119_v25 }
 0xc80   : > { %v1517_v9 = vpop.permute.xlu1 %1516 }
 0xc81   : > { %v1702_v39 = vpop.permute.xlu0 %1701  ;;  %2850 = vmatpush3.bf16.msra.mxu1 %v1820_v24  ;;  %1525 = vst.msk [vmem:[#allocation3 + $0x8] sm:$0xff] %vm1523_vm9, %v1517_v9  ;;  %v2036_v24 = vld [vmem:[%s4199_s14 + $0x10] sm:$0xff]  ;;  %v2038_v9 = vpack.c.bf16 %v2035_v6, %v2034_v19 }
 0xc82   : > { %v3127_v40 = vpop.eup %3126  ;;  %1710 = vst.msk [vmem:[#allocation3 + $0x8] sm:$0xff] %vm1708_vm11, %v1702_v39  ;;  %2855 = vmatprep.subr.bf16.mxu1 %v1908_v51  ;;  %v2039_v7 = vpack.c.bf16 %v2037_v37, %v2036_v24 }
 0xc83   : > { %v3129_v41 = vpop.eup %3128  ;;  %v1816_v42 = vmul.f32 %v3127_v40, %v3121_v28 }
 0xc84   : > { %v1700_v59 = vpop.permute.xlu1 %1699  ;;  %v1815_v44 = vmul.f32 %v3129_v41, %v3123_v31  ;;  %2863 = vmatprep.subr.bf16.mxu0 %v2039_v7 }
 0xc85   : > { %1709 = vst.msk [vmem:[#allocation3] sm:$0xff] %vm1708_vm11, %v1700_v59  ;;  %v1818_v45 = vpack.c.bf16 %v1816_v42, %v1816_v42  ;;  %2864 = vmatpush3.bf16.msra.mxu0 %v2039_v7 }
 0xc86   : > { %v1817_v46 = vpack.c.bf16 %v1815_v44, %v1814_v43  ;;  %2865 = vmatprep.subr.bf16.mxu0 %v2038_v9 }
 0xc88   : > { %2851 = vmatprep.mubr.msk.bf16.mxu1 %vm1237_vm5, %v1817_v46  ;;  %v1704_v47 = vpop.permute.xlu1 %1703 }
 0xc89   : > { %2852 = vmatmul.mubr.msk.bf16.vlgmr.msra.gmra.mxu1 %vm1237_vm5, %v1818_v45  ;;  %1712 = vst.msk [vmem:[#allocation3 + $0x10] sm:$0x1] %vm1711_vm12, %v1704_v47  ;;  %2866 = vmatpush3.bf16.msra.mxu0 %v2038_v9 }
 0xc8a   : > { %2856 = vmatpush3.bf16.msra.mxu1 %v1908_v51 }
 0xc8b   : > { %2857 = vmatprep.subr.bf16.mxu1 %v1907_v53 }
 0xc8e   : > { %2858 = vmatpush3.bf16.msra.mxu1 %v1907_v53 }
 0xd49   : > { %v2853_v54 = vpop.f32.mrf.mxu1 }
 0xd4b   : > { %v1867_v55 = vpop.f32.mrf.mxu1 }
 0xd4c   : > { %1884 = vrot.lane.b32.xlu0 %v1867_v55, %s3584_s23 }
 0xd4d   : > { %v2854_v56 = vpop.f32.mrf.mxu1 }
 0xd4f   : > { %v1870_v57 = vpop.f32.mrf.mxu1 }
 0xd50   : > { %1888 = vrot.lane.b32.xlu0 %v2853_v54, %s3584_s23  ;;  %1886 = vrot.lane.b32.xlu1 %v1870_v57, %s3584_s23 }
 0xdbe   : > { %v1885_v58 = vpop.permute.xlu0 %1884 }
 0xdbf   : > { %1894 = vst.msk [vmem:[#allocation3] sm:$0xff] %vm1893_vm13, %v1885_v58 }
 0xdc2   : > { %v1889_v60 = vpop.permute.xlu0 %1888  ;;  %v1887_v61 = vpop.permute.xlu1 %1886 }
 0xdc3   : > { %1897 = vst.msk [vmem:[#allocation3 + $0x10] sm:$0x1] %vm1896_vm14, %v1889_v60 }
 0xdc4   : > { %1895 = vst.msk [vmem:[#allocation3 + $0x8] sm:$0xff] %vm1893_vm13, %v1887_v61 }
 0xdc6   : > { %v1898_v62 = vld [vmem:[#allocation3] sm:$0xff] }
 0xdca   : > { %v1900_v0 = vld [vmem:[#allocation3 + $0x10] sm:$0x1] }
 0xdcb   : > { %v1899_v63 = vld [vmem:[#allocation3 + $0x8] sm:$0xff]  ;;  %v1902_v2 = vpack.c.bf16 %v1900_v0, %v1900_v0  ;;  %v2137_v0 = vld [vmem:[%s4201_s16 + $0x38] sm:$0xff] }
 0xdcc   : > { %v1901_v1 = vpack.c.bf16 %v1899_v63, %v1898_v62  ;;  %v2136_v63 = vld [vmem:[%s4201_s16 + $0x30] sm:$0xff] }
 0xdce   : > { %2859 = vmatprep.mubr.msk.bf16.mxu1 %vm1030_vm3, %v1901_v1  ;;  %v2141_v1 = vpack.c.bf16 %v2137_v0, %v2136_v63 }
 0xdcf   : > { %2860 = vmatmul.mubr.msk.bf16.vlgmr.msra.gmra.mxu1 %vm1030_vm3, %v1902_v2  ;;  %v2134_v2 = vld [vmem:[%s4201_s16 + $0x20] sm:$0xff] }
 0xdd0   : > { %2871 = vmatprep.subr.bf16.mxu1 %v2141_v1 }
 0xdd1   : > { %2872 = vmatpush3.bf16.msra.mxu1 %v2141_v1 }
 0xe8f   : > { %v2861_v3 = vpop.f32.mrf.mxu1 }
 0xe90   : > { %v1965_v13 = vadd.f32 %v2861_v3, %v2689_v4  ;;  %v2135_v3 = vld [vmem:[%s4201_s16 + $0x28] sm:$0xff] }
 0xe91   : > { %v1956_v5 = vpop.f32.mrf.mxu1 }
 0xe92   : > { %v1957_v8 = vadd.f32 %v2689_v4, %v1956_v5  ;;  %v4080_v17 = vadd.f32 %v1965_v13, %v3928_v29  ;;  %v2132_v5 = vld [vmem:[%s4201_s16 + $0x10] sm:$0xff]  ;;  %v2131_v13 = vld [vmem:[%s4201_s16 + $0x8] sm:$0xff] }
 0xe93   : > { %v2862_v10 = vpop.f32.mrf.mxu1 }
 0xe94   : > { %v4072_v11 = vadd.f32 %v1957_v8, %v3924_v27  ;;  %v1979_v27 = vsel %vm1024_vm2, %v4080_v17, 0.0  ;;  %v2133_v8 = vld [vmem:[%s4201_s16 + $0x18] sm:$0xff] }
 0xe95   : > { %v1959_v12 = vpop.f32.mrf.mxu1  ;;  %v2139_v10 = vpack.c.bf16 %v2133_v8, %v2132_v5 }
 0xe96   : > { %v1960_v14 = vadd.f32 %v2689_v4, %v1959_v12  ;;  %v1973_v15 = vsel %vm1030_vm3, %v4072_v11, 0.0  ;;  %v2140_v4 = vpack.c.bf16 %v2135_v3, %v2134_v2  ;;  %v2130_v12 = vld [vmem:[%s4201_s16] sm:$0xff] }
 0xe97   : > { %1974 = vadd.xlane.f32.xlu1 %v1973_v15  ;;  %v2694_v15 = vld [vmem:[#allocation20] ss:$0 sm:$0xff] }
 0xe98   : > { %v4077_v16 = vadd.f32 %v1960_v14, %v3930_v30  ;;  %2873 = vmatprep.subr.bf16.mxu1 %v2140_v4  ;;  %v2138_v14 = vpack.c.bf16 %v2131_v13, %v2130_v12 }
 0xe99   : > { %2874 = vmatpush3.bf16.msra.mxu1 %v2140_v4 }
 0xe9a   : > { %v1976_v18 = vsel %vm1030_vm3, %v4077_v16, 0.0  ;;  %2875 = vmatprep.subr.bf16.mxu1 %v2139_v10 }
 0xe9b   : > { %1977 = vadd.xlane.f32.xlu0 %v1976_v18 }
 0xe9d   : > { %2876 = vmatpush3.bf16.msra.mxu1 %v2139_v10 }
 0xe9e   : > { %2877 = vmatprep.subr.bf16.mxu1 %v2138_v14 }
 0xe9f   : > { %1980 = vadd.xlane.f32.xlu0 %v1979_v27 }
 0xea1   : > { %2878 = vmatpush3.bf16.msra.mxu1 %v2138_v14 }
 0xf20   : > { %v1975_v20 = vpop.xlane.xlu1 %1974 }
 0xf21   : > { %v1982_v21 = vmul.f32 0.03125, %v1975_v20 }
 0xf23   : > { %v1985_v22 = vsub.f32 %v4072_v11, %v1982_v21 }
 0xf24   : > { %v1978_v23 = vpop.xlane.xlu0 %1977 }
 0xf25   : > { %v1983_v25 = vmul.f32 0.03125, %v1978_v23  ;;  %v1988_v26 = vmul.f32 %v1985_v22, %v1985_v22 }
 0xf27   : > { %v1986_v30 = vsub.f32 %v4077_v16, %v1983_v25  ;;  %v1991_v29 = vsel %vm1030_vm3, %v1988_v26, 0.0 }
 0xf28   : > { %v1981_v28 = vpop.xlane.xlu0 %1980  ;;  %1992 = vadd.xlane.f32.xlu0 %v1991_v29 }
 0xf29   : > { %v1984_v31 = vmul.f32 0.03125, %v1981_v28  ;;  %v1989_v32 = vmul.f32 %v1986_v30, %v1986_v30 }
 0xf2b   : > { %v1987_v33 = vsub.f32 %v4080_v17, %v1984_v31  ;;  %v1994_v34 = vsel %vm1030_vm3, %v1989_v32, 0.0 }
 0xf2c   : > { %1995 = vadd.xlane.f32.xlu1 %v1994_v34 }
 0xf2d   : > { %v1990_v35 = vmul.f32 %v1987_v33, %v1987_v33 }
 0xf2f   : > { %v1997_v36 = vsel %vm1024_vm2, %v1990_v35, 0.0 }
 0xf30   : > { %1998 = vadd.xlane.f32.xlu0 %v1997_v36 }
 0xfb1   : > { %v1993_v38 = vpop.xlane.xlu0 %1992 }
 0xfb2   : > { %v2000_v39 = vmul.f32 0.03125, %v1993_v38 }
 0xfb4   : > { %v2003_v40 = vadd.f32 1e-06, %v2000_v39 }
 0xfb5   : > { %v1996_v41 = vpop.xlane.xlu1 %1995 }
 0xfb6   : > { %3130 = vrsqrt.f32 %v2003_v40  ;;  %v2001_v42 = vmul.f32 0.03125, %v1996_v41 }
 0xfb8   : > { %v2004_v59 = vadd.f32 1e-06, %v2001_v42 }
 0xfb9   : > { %v1999_v43 = vpop.xlane.xlu0 %1998 }
 0xfba   : > { %3132 = vrsqrt.f32 %v2004_v59  ;;  %v2002_v44 = vmul.f32 0.03125, %v1999_v43 }
 0xfbc   : > { %v2005_v45 = vadd.f32 1e-06, %v2002_v44 }
 0xfbe   : > { %3134 = vrsqrt.f32 %v2005_v45 }
 0xfc3   : > { %v3131_v46 = vpop.eup %3130 }
 0xfc4   : > { %v2009_v47 = vmul.f32 %v3131_v46, %v1985_v22 }
 0xfc6   : > { %v2019_v51 = vmul.f32 %v2692_v48, %v2009_v47 }
 0xfc7   : > { %v3133_v49 = vpop.eup %3132 }
 0xfc8   : > { %v2010_v50 = vmul.f32 %v3133_v49, %v1986_v30  ;;  %v2029_v56 = vadd.f32 %v2693_v52, %v2019_v51  ;;  %v2697_v51 = vld [vmem:[#allocation21] ss:$0 sm:$0xff] }
 0xfca   : > { %v2020_v53 = vmul.f32 %v2692_v48, %v2010_v50 }
 0xfcb   : > { %v3135_v54 = vpop.eup %3134 }
 0xfcc   : > { %v2011_v55 = vmul.f32 %v3135_v54, %v1987_v33  ;;  %v2030_v57 = vadd.f32 %v2693_v52, %v2020_v53 }
 0xfce   : > { %v2032_v58 = vpack.c.bf16 %v2030_v57, %v2029_v56  ;;  %v2021_v60 = vmul.f32 %v2692_v48, %v2011_v55 }
 0xfd0   : > { %2867 = vmatprep.mubr.msk.bf16.mxu0 %vm1030_vm3, %v2032_v58  ;;  %v2031_v61 = vadd.f32 %v2693_v52, %v2021_v60 }
 0xfd2   : > { %v2033_v62 = vpack.c.bf16 %v2031_v61, %v2031_v61 }
 0xfd4   : > { %2868 = vmatmul.mubr.msk.bf16.vlgmr.msra.gmra.mxu0 %vm1030_vm3, %v2033_v62 }
0x1094   : > { %v2869_v18 = vpop.f32.mrf.mxu0 }
0x1095   : > { %v2096_v27 = vadd.f32 %v2869_v18, %v2694_v15 }
0x1096   : > { %v2087_v20 = vpop.f32.mrf.mxu0 }
0x1097   : > { %v2103_v21 = vmul.f32 %v2096_v27, %v2096_v27  ;;  %v2088_v22 = vadd.f32 %v2694_v15, %v2087_v20  ;;  %v2271_v20 = vld [vmem:[%s4205_s20 + $0x18] sm:$0xff] }
0x1098   : > { %v2870_v23 = vpop.f32.mrf.mxu0 }
0x1099   : > { %v2106_v25 = vmul.f32 %v2103_v21, %v2096_v27  ;;  %v2101_v26 = vmul.f32 %v2088_v22, %v2088_v22  ;;  %v2269_v23 = vld [vmem:[%s4205_s20 + $0x8] sm:$0xff] }
0x109a   : > { %v2090_v30 = vpop.f32.mrf.mxu0 }
0x109b   : > { %v2109_v29 = vmul.f32 0.044715, %v2106_v25  ;;  %v2104_v28 = vmul.f32 %v2101_v26, %v2088_v22  ;;  %v2091_v31 = vadd.f32 %v2694_v15, %v2090_v30  ;;  %v2342_v26 = vld [vmem:[%s4207_s22 + $0x10] sm:$0xff]  ;;  %v2343_v30 = vld [vmem:[%s4207_s22 + $0x18] sm:$0xff] }
0x109d   : > { %v2112_v32 = vadd.f32 %v2109_v29, %v2096_v27  ;;  %v2107_v33 = vmul.f32 0.044715, %v2104_v28  ;;  %v2102_v34 = vmul.f32 %v2091_v31, %v2091_v31  ;;  %v2345_v29 = vpack.c.bf16 %v2343_v30, %v2342_v26 }
0x109f   : > { %v2115_v35 = vmul.f32 0.7978846, %v2112_v32  ;;  %v2110_v36 = vadd.f32 %v2107_v33, %v2088_v22  ;;  %v2105_v24 = vmul.f32 %v2102_v34, %v2091_v31 }
0x10a1   : > { %3136 = vtanh.f32 %v2115_v35  ;;  %v2113_v37 = vmul.f32 0.7978846, %v2110_v36  ;;  %v2108_v7 = vmul.f32 0.044715, %v2105_v24 }
0x10a3   : > { %3138 = vtanh.f32 %v2113_v37  ;;  %v2111_v19 = vadd.f32 %v2108_v7, %v2091_v31 }
0x10a5   : > { %v2114_v6 = vmul.f32 0.7978846, %v2111_v19 }
0x10a7   : > { %3140 = vtanh.f32 %v2114_v6  ;;  %v2700_v6 = vld [vmem:[#allocation23] ss:$0 sm:$0xff] }
0x10ae   : > { %v3137_v9 = vpop.eup %3136 }
0x10af   : > { %v2121_v39 = vadd.f32 1.0, %v3137_v9 }
0x10b0   : > { %v3139_v38 = vpop.eup %3138 }
0x10b1   : > { %v2119_v40 = vadd.f32 1.0, %v3139_v38  ;;  %v2124_v42 = vmul.f32 0.5, %v2121_v39 }
0x10b3   : > { %v2122_v59 = vmul.f32 0.5, %v2119_v40  ;;  %v2127_v45 = vmul.f32 %v2124_v42, %v2096_v27  ;;  %v2270_v27 = vld [vmem:[%s4205_s20 + $0x10] sm:$0xff]  ;;  %v2701_v42 = vld [vmem:[#allocation24] ss:$0 sm:$0xff] }
0x10b4   : > { %v3141_v41 = vpop.eup %3140  ;;  %v2273_v21 = vpack.c.bf16 %v2271_v20, %v2270_v27 }
0x10b5   : > { %v2120_v43 = vadd.f32 1.0, %v3141_v41  ;;  %v2125_v46 = vmul.f32 %v2122_v59, %v2088_v22  ;;  %v2129_v49 = vpack.c.bf16 %v2127_v45, %v2127_v45  ;;  %v2268_v22 = vld [vmem:[%s4205_s20] sm:$0xff] }
0x10b6   : > { %v2272_v25 = vpack.c.bf16 %v2269_v23, %v2268_v22  ;;  %2883 = vmatprep.subr.bf16.mxu0 %v2273_v21 }
0x10b7   : > { %v2123_v44 = vmul.f32 0.5, %v2120_v43  ;;  %2884 = vmatpush3.bf16.msra.mxu0 %v2273_v21 }
0x10b8   : > { %2885 = vmatprep.subr.bf16.mxu0 %v2272_v25 }
0x10b9   : > { %v2126_v47 = vmul.f32 %v2123_v44, %v2091_v31 }
0x10bb   : > { %v2128_v48 = vpack.c.bf16 %v2126_v47, %v2125_v46  ;;  %2886 = vmatpush3.bf16.msra.mxu0 %v2272_v25  ;;  %v2340_v47 = vld [vmem:[%s4207_s22] sm:$0xff] }
0x10bc   : > { %2891 = vmatprep.subr.bf16.mxu0 %v2345_v29 }
0x10bd   : > { %2879 = vmatprep.mubr.msk.bf16.mxu1 %vm2149_vm15, %v2128_v48  ;;  %v2341_v48 = vld [vmem:[%s4207_s22 + $0x8] sm:$0xff] }
0x10be   : > { %2880 = vmatmul.mubr.msk.bf16.vlgmr.msra.gmra.mxu1 %vm2149_vm15, %v2129_v49 }
0x117e   : > { %v2881_v50 = vpop.f32.mrf.mxu1 }
0x117f   : > { %v2199_v53 = vadd.f32 %v2881_v50, %v2697_v51 }
0x1180   : > { %v2190_v52 = vpop.f32.mrf.mxu1 }
0x1181   : > { %v2191_v54 = vadd.f32 %v2697_v51, %v2190_v52  ;;  %v2206_v61 = vadd.f32 %v2199_v53, %v4080_v17  ;;  %v2702_v52 = vld [vmem:[%s4206_s21] ss:$0 sm:$0xff] }
0x1182   : > { %v2882_v55 = vpop.f32.mrf.mxu1 }
0x1183   : > { %v2204_v56 = vadd.f32 %v2191_v54, %v4072_v11  ;;  %v2213_v0 = vsel %vm1024_vm2, %v2206_v61, 0.0 }
0x1184   : > { %v2193_v57 = vpop.f32.mrf.mxu1 }
0x1185   : > { %v2194_v58 = vadd.f32 %v2697_v51, %v2193_v57  ;;  %v2207_v60 = vsel %vm1030_vm3, %v2204_v56, 0.0  ;;  %v2344_v51 = vpack.c.bf16 %v2341_v48, %v2340_v47 }
0x1186   : > { %2208 = vadd.xlane.f32.xlu1 %v2207_v60  ;;  %v2705_v60 = vld [vmem:[%s4257_s27] ss:$0 sm:$0xff] }
0x1187   : > { %v2205_v62 = vadd.f32 %v2194_v58, %v4077_v16 }
0x1189   : > { %v2210_v63 = vsel %vm1030_vm3, %v2205_v62, 0.0 }
0x118a   : > { %2211 = vadd.xlane.f32.xlu0 %v2210_v63  ;;  %2214 = vadd.xlane.f32.xlu1 %v2213_v0 }
0x120f   : > { %v2209_v1 = vpop.xlane.xlu1 %2208 }
0x1210   : > { %v2216_v2 = vmul.f32 0.03125, %v2209_v1 }
0x1212   : > { %v2219_v3 = vsub.f32 %v2204_v56, %v2216_v2 }
0x1213   : > { %v2212_v4 = vpop.xlane.xlu0 %2211  ;;  %v2215_v11 = vpop.xlane.xlu1 %2214 }
0x1214   : > { %v2217_v5 = vmul.f32 0.03125, %v2212_v4  ;;  %v2218_v8 = vmul.f32 0.03125, %v2215_v11  ;;  %v2222_v10 = vmul.f32 %v2219_v3, %v2219_v3 }
0x1216   : > { %v2220_v12 = vsub.f32 %v2205_v62, %v2217_v5  ;;  %v2221_v13 = vsub.f32 %v2206_v61, %v2218_v8  ;;  %v2225_v17 = vsel %vm1030_vm3, %v2222_v10, 0.0 }
0x1217   : > { %2226 = vadd.xlane.f32.xlu0 %v2225_v17 }
0x1218   : > { %v2223_v16 = vmul.f32 %v2220_v12, %v2220_v12  ;;  %v2224_v14 = vmul.f32 %v2221_v13, %v2221_v13 }
0x121a   : > { %v2228_v15 = vsel %vm1030_vm3, %v2223_v16, 0.0  ;;  %v2231_v18 = vsel %vm1024_vm2, %v2224_v14, 0.0  ;;  %vm2335_vm2 = vcmask 130048  }
0x121b   : > { %2229 = vadd.xlane.f32.xlu1 %v2228_v15  ;;  %2232 = vadd.xlane.f32.xlu0 %v2231_v18 }
0x12a0   : > { %v2227_v28 = vpop.xlane.xlu0 %2226 }
0x12a1   : > { %v2234_v31 = vmul.f32 0.03125, %v2227_v28 }
0x12a3   : > { %v2237_v32 = vadd.f32 1e-06, %v2234_v31 }
0x12a4   : > { %v2233_v33 = vpop.xlane.xlu0 %2232  ;;  %v2230_v34 = vpop.xlane.xlu1 %2229 }
0x12a5   : > { %3142 = vrsqrt.f32 %v2237_v32  ;;  %v2236_v35 = vmul.f32 0.03125, %v2233_v33  ;;  %v2235_v36 = vmul.f32 0.03125, %v2230_v34 }
0x12a7   : > { %v2239_v24 = vadd.f32 1e-06, %v2236_v35  ;;  %v2238_v37 = vadd.f32 1e-06, %v2235_v36 }
0x12a9   : > { %3144 = vrsqrt.f32 %v2239_v24 }
0x12aa   : > { %3146 = vrsqrt.f32 %v2238_v37 }
0x12b2   : > { %v3143_v7 = vpop.eup %3142 }
0x12b3   : > { %v2243_v19 = vmul.f32 %v3143_v7, %v2219_v3 }
0x12b5   : > { %v2253_v41 = vmul.f32 %v2700_v6, %v2243_v19 }
0x12b6   : > { %v3145_v9 = vpop.eup %3144 }
0x12b7   : > { %v3147_v38 = vpop.eup %3146  ;;  %v2245_v39 = vmul.f32 %v3145_v9, %v2221_v13  ;;  %v2263_v45 = vadd.f32 %v2701_v42, %v2253_v41 }
0x12b8   : > { %v2244_v40 = vmul.f32 %v3147_v38, %v2220_v12 }
0x12b9   : > { %v2255_v59 = vmul.f32 %v2700_v6, %v2245_v39 }
0x12ba   : > { %v2254_v43 = vmul.f32 %v2700_v6, %v2244_v40 }
0x12bb   : > { %v2265_v44 = vadd.f32 %v2701_v42, %v2255_v59 }
0x12bc   : > { %v2264_v46 = vadd.f32 %v2701_v42, %v2254_v43 }
0x12bd   : > { %v2267_v49 = vpack.c.bf16 %v2265_v44, %v2265_v44 }
0x12be   : > { %v2266_v50 = vpack.c.bf16 %v2264_v46, %v2263_v45 }
0x12c0   : > { %2887 = vmatprep.mubr.msk.bf16.mxu0 %vm1030_vm3, %v2266_v50 }
0x12c1   : > { %2888 = vmatmul.mubr.msk.bf16.vlgmr.msra.gmra.mxu0 %vm1030_vm3, %v2267_v49 }
0x12c2   : > { %2892 = vmatpush3.bf16.msra.mxu0 %v2345_v29  ;;  %2895 = vmatprep.mubr.msk.bf16.mxu0 %vm1030_vm3, %v2266_v50 }
0x12c3   : > { %2893 = vmatprep.subr.bf16.mxu0 %v2344_v51 }
0x12c6   : > { %2894 = vmatpush3.bf16.msra.mxu0 %v2344_v51 }
0x12c9   : > { %2896 = vmatmul.mubr.msk.bf16.vlgmr.msra.gmra.mxu0 %vm1030_vm3, %v2267_v49  ;;  %vm2403_vm3 = vcmask 385024  }
0x1381   : > { %v2889_v53 = vpop.f32.mrf.mxu0 }
0x1382   : > { %v2330_v54 = vadd.f32 %v2889_v53, %v2702_v52 }
0x1383   : > { %v2321_v55 = vpop.f32.mrf.mxu0 }
0x1384   : > { %2339 = vst.msk [vmem:[%s950_s29 + $0x10] sm:$0x1] %vm2338_vm0, %v2330_v54  ;;  %v2322_v56 = vadd.f32 %v2702_v52, %v2321_v55 }
0x1385   : > { %v2890_v57 = vpop.f32.mrf.mxu0 }
0x1386   : > { %2336 = vst.msk [vmem:[%s950_s29] sm:$0xff] %vm2335_vm2, %v2322_v56 }
0x1387   : > { %v2324_v58 = vpop.f32.mrf.mxu0 }
0x1388   : > { %v2325_v61 = vadd.f32 %v2702_v52, %v2324_v58 }
0x1389   : > { %v2897_v62 = vpop.f32.mrf.mxu0 }
0x138a   : > { %2337 = vst.msk [vmem:[%s950_s29 + $0x8] sm:$0xff] %vm2335_vm2, %v2325_v61  ;;  %v2396_v63 = vadd.f32 %v2897_v62, %v2705_v60 }
0x138b   : > { %v2387_v0 = vpop.f32.mrf.mxu0 }
0x138c   : > { %2404 = vst.msk [vmem:[%s955_s6 + $0x10] sm:$0x1] %vm2403_vm3, %v2396_v63  ;;  %v2388_v1 = vadd.f32 %v2705_v60, %v2387_v0 }
0x138d   : > { %v2898_v2 = vpop.f32.mrf.mxu0 }
0x138e   : > { %2401 = vst.msk [vmem:[%s955_s6] sm:$0xff] %vm976_vm1, %v2388_v1 }
0x138f   : > { %v2390_v3 = vpop.f32.mrf.mxu0 }
0x1390   : > { %v2391_v4 = vadd.f32 %v2705_v60, %v2390_v3 }
0x1392   : > { %2402 = vst.msk [vmem:[%s955_s6 + $0x8] sm:$0xff] %vm976_vm1, %v2391_v4 }
0x1393 PF: > { %s4259_s7 = sld [smem:[#allocation34_spill]] }
0x1399   : > { %s44_s29 = sadd.s32 1, %s4259_s7  }
0x139a   : > { %p41_p10 = scmp.ge.s32.totalorder %s44_s29, 6  }
0x139c   :  { %43 = sbr.rel (!%p41_p10) target bundleno = 21 (0x15), region = 215 }
0x13a1   :  { %2442 = vsyncpa [#allocation5], 1 }
0x13a2   :  { %2444 = vsyncpa [#allocation5 + $0x1], 1 }
0x13a3   :  { %2445 = vsyncpa [#allocation7], 1 }
0x13a4   :  { %2446 = vsyncpa [#allocation10], 1 }
0x13a5   :  { %2447 = vsyncpa [#allocation13], 1 }
0x13a6   :  { %2448 = vsyncpa [#allocation16], 1 }
0x13a7   :  { %2449 = vsyncpa [#allocation19], 1 }
0x13a8   :  { %2450 = vsyncpa [#allocation22], 1 }
0x13a9   :  { %2451 = vsyncpa [#allocation25], 1 }

</bundles_post_ra>
